<compile_context>
chip_gen: v7x
topology: tpu7x:2x2x1
jax: 0.10.0
libtpu: 0.0.40
codegen_flags: <defaults>
</compile_context>

<pallas_src>
import functools

import jax
import jax.numpy as jnp
import numpy as np
from jax import lax
from jax.experimental import pallas as pl
from jax.experimental.pallas import tpu as pltpu

EPS = 1e-5


def make_banded_weights(w_oihw, W):
    """Pack a 3x3 conv weight (OIHW) into 3 banded matmul weights.

    Returns wb of shape (3*W*Cin, W*Cout); the ky-th (W*Cin, W*Cout) block
    satisfies
        wb[ky*W*Cin + (w+kx-1)*Cin + ci, w*Cout + co] = w_oihw[co, ci, ky, kx]
    for 0 <= w+kx-1 < W.  Out-of-range bands are simply absent, which is
    exactly zero padding along W, so a row-shifted (rows, W*Cin) activation
    slab times the ky-th block accumulates the full 3x3 convolution.
    Host-side weight packing (one-time, data independent).
    """
    w_np = np.asarray(w_oihw, dtype=np.float32)
    Cout, Cin, KH, KW = w_np.shape
    wb = np.zeros((KH, W * Cin, W * Cout), np.float32)
    for ky in range(KH):
        for kx in range(KW):
            blk = w_np[:, :, ky, kx].T                       # (Cin, Cout)
            for w in range(W):
                iw = w + kx - 1
                if 0 <= iw < W:
                    wb[ky, iw * Cin:(iw + 1) * Cin,
                       w * Cout:(w + 1) * Cout] = blk
    return jnp.asarray(wb.reshape(KH * W * Cin, W * Cout))


def basic_block_kernel(x_ref, w1_ref, g1_ref, b1_ref, w2_ref, g2_ref, b2_ref,
                       out_ref, xpad_ref, hpad_ref, *,
                       B, H, W, Cin, Cmid, Cout):
    """Whole-block kernel; everything resident in VMEM (small test shapes).

    x_ref    : (B*H, W*Cin)          lane-dense input rows
    w1_ref   : (3*W*Cin,  W*Cmid)    conv1 banded weights (one block per ky)
    g1/b1    : (1, Cmid)             BN1 gamma / beta
    w2_ref   : (3*W*Cmid, W*Cout)    conv2 banded weights
    g2/b2    : (1, Cout)             BN2 gamma / beta
    out_ref  : (B*H, W*Cout)
    xpad_ref : (B*(H+2), W*Cin)      VMEM scratch: row-padded input
    hpad_ref : (B*(H+2), W*Cmid)     VMEM scratch: row-padded hidden map
    """
    Lin, Lmid, Lout = W * Cin, W * Cmid, W * Cout
    Hp = H + 2                        # rows per image incl. 1-row halo
    Rp = B * Hp                       # total padded rows
    Rc = Rp - 2                       # rows the conv outputs are computed for
    inv_n = 1.0 / (B * H * W)

    # (1, Rc) reduction vector: 1.0 on rows holding real pixels, 0.0 on halo /
    # cross-image rows.  Folding validity into the reduction vector keeps the
    # BN statistics exact without an extra elementwise mask pass.
    col = lax.broadcasted_iota(jnp.int32, (1, Rc), 1)
    rr = (col + 1) % Hp
    mask_row = jnp.logical_and(rr >= 1, rr <= H).astype(jnp.float32)

    def chan_reduce_mat(L, C):        # (L, C): lane -> its channel
        lane_c = lax.broadcasted_iota(jnp.int32, (L, C), 0) % C
        ch = lax.broadcasted_iota(jnp.int32, (L, C), 1)
        return (lane_c == ch).astype(jnp.float32)

    def chan_bcast_mat(C, L):         # (C, L): channel -> all its W lanes
        ch = lax.broadcasted_iota(jnp.int32, (C, L), 0)
        lane_c = lax.broadcasted_iota(jnp.int32, (C, L), 1) % C
        return (ch == lane_c).astype(jnp.float32)

    def conv3x3(src_ref, w_ref, lin):
        # 3 accumulating MXU dots (one per vertical tap).  kx taps and the
        # W zero-padding are folded into the banded weights, so each operand
        # is a dense row-contiguous (Rc, lin) slab — no im2col, no reshapes.
        acc = jnp.dot(src_ref[0:Rc, :], w_ref[0:lin, :],
                      preferred_element_type=jnp.float32)
        for ky in (1, 2):
            acc = acc + jnp.dot(src_ref[ky:ky + Rc, :],
                                w_ref[ky * lin:(ky + 1) * lin, :],
                                preferred_element_type=jnp.float32)
        return acc

    def batch_norm(acc, g_ref, b_ref, C, L):
        # Training-mode batch stats (biased variance, eps=1e-5), two-pass.
        # Row reductions routed through the MXU (masked ones-row matmul);
        # W-group -> channel reduce and channel -> lane broadcast are tiny
        # selector matmuls, so everything stays in the lane-dense layout.
        s_r = chan_reduce_mat(L, C)
        s_b = chan_bcast_mat(C, L)
        sum_lane = jnp.dot(mask_row, acc, preferred_element_type=jnp.float32)
        mean_c = jnp.dot(sum_lane, s_r,
                         preferred_element_type=jnp.float32) * inv_n
        mean_lane = jnp.dot(mean_c, s_b, preferred_element_type=jnp.float32)
        diff = acc - mean_lane
        sq_lane = jnp.dot(mask_row, diff * diff,
                          preferred_element_type=jnp.float32)
        var_c = jnp.dot(sq_lane, s_r,
                        preferred_element_type=jnp.float32) * inv_n
        scale_c = g_ref[...] * lax.rsqrt(var_c + EPS)
        shift_c = b_ref[...] - mean_c * scale_c
        scale_lane = jnp.dot(scale_c, s_b, preferred_element_type=jnp.float32)
        shift_lane = jnp.dot(shift_c, s_b, preferred_element_type=jnp.float32)
        return acc * scale_lane + shift_lane

    # ---- row-padded input: one zero row above/below each image (the W halo
    #      lives in the banded weights, so rows stay W*C wide / lane-dense) --
    xpad_ref[...] = jnp.zeros((Rp, Lin), jnp.float32)
    for b in range(B):
        xpad_ref[b * Hp + 1:b * Hp + 1 + H, :] = x_ref[b * H:(b + 1) * H, :]

    # ---- conv1 -> BN1 -> ReLU ----------------------------------------------
    acc1 = conv3x3(xpad_ref, w1_ref, Lin)
    h = jnp.maximum(batch_norm(acc1, g1_ref, b1_ref, Cmid, Lmid), 0.0)

    # ---- re-pad hidden map (only valid rows are copied, so the cross-image
    #      garbage rows of `h` never reach conv2) -----------------------------
    hpad_ref[...] = jnp.zeros((Rp, Lmid), jnp.float32)
    for b in range(B):
        hpad_ref[b * Hp + 1:b * Hp + 1 + H, :] = h[b * Hp:b * Hp + H, :]

    # ---- conv2 -> BN2 --------------------------------------------------------
    acc2 = conv3x3(hpad_ref, w2_ref, Lmid)
    res = batch_norm(acc2, g2_ref, b2_ref, Cout, Lout)

    # ---- identity shortcut + final ReLU; store valid rows per image ---------
    for b in range(B):
        out_ref[b * H:(b + 1) * H, :] = jnp.maximum(
            res[b * Hp:b * Hp + H, :] + x_ref[b * H:(b + 1) * H, :], 0.0)


@functools.partial(jax.jit,
                   static_argnames=("B", "H", "W", "Cin", "Cmid", "Cout"))
def basic_block_2d(x2d, w1b, g1, b1, w2b, g2, b2, *, B, H, W, Cin, Cmid, Cout):
    Rp = B * (H + 2)
    kernel = functools.partial(basic_block_kernel, B=B, H=H, W=W,
                               Cin=Cin, Cmid=Cmid, Cout=Cout)
    return pl.pallas_call(
        kernel,
        out_shape=jax.ShapeDtypeStruct((B * H, W * Cout), jnp.float32),
        in_specs=[pl.BlockSpec(memory_space=pltpu.MemorySpace.VMEM)] * 7,
        out_specs=pl.BlockSpec(memory_space=pltpu.MemorySpace.VMEM),
        scratch_shapes=[
            pltpu.VMEM((Rp, W * Cin), jnp.float32),    # row-padded input
            pltpu.VMEM((Rp, W * Cmid), jnp.float32),   # row-padded hidden map
        ],
        # Resident footprint ~130 KiB -> default scoped-VMEM limits are ample
        # on v5e/v6e/v7x; no vmem_limit_bytes over-ask.
    )(x2d, w1b, g1, b1, w2b, g2, b2)


# ----------------------------- reference (plain JAX, NCHW like PyTorch) -----
def ref_forward(x_nchw, w1_oihw, g1, b1, w2_oihw, g2, b2):
    def conv(x, w):
        return lax.conv_general_dilated(
            x, w, window_strides=(1, 1), padding=((1, 1), (1, 1)),
            dimension_numbers=("NCHW", "OIHW", "NCHW"))

    def bn(x, g, b):
        mu = jnp.mean(x, axis=(0, 2, 3), keepdims=True)
        var = jnp.mean((x - mu) ** 2, axis=(0, 2, 3), keepdims=True)
        return (x - mu) * (g.reshape(1, -1, 1, 1) * lax.rsqrt(var + EPS)) \
            + b.reshape(1, -1, 1, 1)

    h = jnp.maximum(bn(conv(x_nchw, w1_oihw), g1, b1), 0.0)
    r = bn(conv(h, w2_oihw), g2, b2)
    return jnp.maximum(r + x_nchw, 0.0)


if __name__ == "__main__":
    key = jax.random.PRNGKey(0)
    B, Cin, H, W = 2, 4, 16, 16
    Cmid = Cin                      # inner_channels (identity shortcut => equal)
    Cout = Cmid * 1                 # expansion = 1
    assert Cin == Cout, "identity shortcut requires Cin == Cout (no projection)"

    k = jax.random.split(key, 7)
    x_nchw = jax.random.normal(k[0], (B, Cin, H, W), jnp.float32)
    # Conv weights in PyTorch OIHW layout, deterministic init.
    w1_oihw = jax.random.normal(k[1], (Cmid, Cin, 3, 3), jnp.float32) * 0.2
    w2_oihw = jax.random.normal(k[2], (Cout, Cmid, 3, 3), jnp.float32) * 0.2
    # BatchNorm affine params (deterministic, non-trivial).
    g1 = 1.0 + 0.1 * jax.random.normal(k[3], (Cmid,), jnp.float32)
    b1 = 0.1 * jax.random.normal(k[4], (Cmid,), jnp.float32)
    g2 = 1.0 + 0.1 * jax.random.normal(k[5], (Cout,), jnp.float32)
    b2 = 0.1 * jax.random.normal(k[6], (Cout,), jnp.float32)

    # ---- glue: NCHW -> lane-dense (B*H, W*C); OIHW -> banded matmul weights --
    x2d = jnp.transpose(x_nchw, (0, 2, 3, 1)).reshape(B * H, W * Cin)
    w1b = make_banded_weights(w1_oihw, W)          # (3*W*Cin,  W*Cmid)
    w2b = make_banded_weights(w2_oihw, W)          # (3*W*Cmid, W*Cout)

    out2d = basic_block_2d(x2d, w1b,
                           g1.reshape(1, -1), b1.reshape(1, -1),
                           w2b,
                           g2.reshape(1, -1), b2.reshape(1, -1),
                           B=B, H=H, W=W, Cin=Cin, Cmid=Cmid, Cout=Cout)
    out2d = jax.block_until_ready(out2d)
    out_nchw = jnp.transpose(out2d.reshape(B, H, W, Cout), (0, 3, 1, 2))

    ref = jax.block_until_ready(
        ref_forward(x_nchw, w1_oihw, g1, b1, w2_oihw, g2, b2))

    assert out_nchw.shape == (B, Cout, H, W)
    assert jnp.allclose(out_nchw, ref, atol=2e-4, rtol=2e-4), (
        float(jnp.max(jnp.abs(out_nchw - ref))))
    print("KERNEL_OK")
</pallas_src>

<mosaic_0001>
module attributes {stable_mosaic.version = 11 : i64} {
  func.func @basic_block_kernel(%arg0: memref<32x64xf32, #tpu.memory_space<vmem>>, %arg1: memref<192x64xf32, #tpu.memory_space<vmem>>, %arg2: memref<1x4xf32, #tpu.memory_space<vmem>>, %arg3: memref<1x4xf32, #tpu.memory_space<vmem>>, %arg4: memref<192x64xf32, #tpu.memory_space<vmem>>, %arg5: memref<1x4xf32, #tpu.memory_space<vmem>>, %arg6: memref<1x4xf32, #tpu.memory_space<vmem>>, %arg7: memref<32x64xf32, #tpu.memory_space<vmem>>, %arg8: memref<36x64xf32, #tpu.memory_space<vmem>>, %arg9: memref<36x64xf32, #tpu.memory_space<vmem>>) attributes {dimension_semantics = [], scalar_prefetch = 0 : i64, scratch_operands = 2 : i64, tpu.core_type = #tpu.core_type<tc>} {
    %0 = tpu.iota {dimensions = array<i32: 1>} : vector<1x34xi32>
    %c1_i32 = arith.constant 1 : i32
    %1 = vector.broadcast %c1_i32 : i32 to vector<1x34xi32>
    %2 = arith.addi %0, %1 : vector<1x34xi32>
    %c18_i32 = arith.constant 18 : i32
    %c0_i32 = arith.constant 0 : i32
    %3 = arith.cmpi eq, %c18_i32, %c0_i32 : i32
    %c1_i32_0 = arith.constant 1 : i32
    %4 = arith.select %3, %c1_i32_0, %c18_i32 : i32
    %5 = vector.broadcast %4 : i32 to vector<1x34xi32>
    %6 = arith.remsi %2, %5 : vector<1x34xi32>
    %c0_i32_1 = arith.constant 0 : i32
    %7 = vector.broadcast %c0_i32_1 : i32 to vector<1x34xi32>
    %8 = arith.cmpi ne, %6, %7 : vector<1x34xi32>
    %c0_i32_2 = arith.constant 0 : i32
    %9 = vector.broadcast %c0_i32_2 : i32 to vector<1x34xi32>
    %10 = arith.cmpi slt, %6, %9 : vector<1x34xi32>
    %c0_i32_3 = arith.constant 0 : i32
    %11 = arith.cmpi slt, %4, %c0_i32_3 : i32
    %12 = vector.broadcast %11 : i1 to vector<1x34xi1>
    %13 = vector.broadcast %12 : vector<1x34xi1> to vector<1x34xi1>
    %14 = arith.xori %10, %13 : vector<1x34xi1>
    %15 = arith.andi %14, %8 : vector<1x34xi1>
    %16 = vector.broadcast %4 : i32 to vector<1x34xi32>
    %17 = arith.addi %6, %16 : vector<1x34xi32>
    %18 = arith.select %15, %17, %6 : vector<1x34xi1>, vector<1x34xi32>
    %c1_i32_4 = arith.constant 1 : i32
    %19 = vector.broadcast %c1_i32_4 : i32 to vector<1x34xi32>
    %20 = arith.cmpi sge, %18, %19 : vector<1x34xi32>
    %c16_i32 = arith.constant 16 : i32
    %21 = vector.broadcast %c16_i32 : i32 to vector<1x34xi32>
    %22 = arith.cmpi sle, %18, %21 : vector<1x34xi32>
    %23 = arith.andi %20, %22 : vector<1x34xi1>
    %24 = arith.extui %23 : vector<1x34xi1> to vector<1x34xi32>
    %25 = arith.sitofp %24 : vector<1x34xi32> to vector<1x34xf32>
    %cst = arith.constant 0.000000e+00 : f32
    %26 = vector.broadcast %cst : f32 to vector<36x64xf32>
    %c0 = arith.constant 0 : index
    %c0_5 = arith.constant 0 : index
    %27 = vector.load %arg8[%c0, %c0_5] : memref<36x64xf32, #tpu.memory_space<vmem>>, vector<36x64xf32>
    tpu.vector_store %arg8[%c0, %c0_5], %26 {strides = array<i32>} : memref<36x64xf32, #tpu.memory_space<vmem>>, vector<36x64xf32>,
    %c0_6 = arith.constant 0 : index
    %c0_7 = arith.constant 0 : index
    %28 = vector.load %arg0[%c0_6, %c0_7] : memref<32x64xf32, #tpu.memory_space<vmem>>, vector<16x64xf32>
    %c1 = arith.constant 1 : index
    %c0_8 = arith.constant 0 : index
    %29 = vector.load %arg8[%c1, %c0_8] : memref<36x64xf32, #tpu.memory_space<vmem>>, vector<16x64xf32>
    tpu.vector_store %arg8[%c1, %c0_8], %28 {strides = array<i32>} : memref<36x64xf32, #tpu.memory_space<vmem>>, vector<16x64xf32>,
    %c16 = arith.constant 16 : index
    %c0_9 = arith.constant 0 : index
    %30 = vector.load %arg0[%c16, %c0_9] : memref<32x64xf32, #tpu.memory_space<vmem>>, vector<16x64xf32>
    %c19 = arith.constant 19 : index
    %c0_10 = arith.constant 0 : index
    %31 = vector.load %arg8[%c19, %c0_10] : memref<36x64xf32, #tpu.memory_space<vmem>>, vector<16x64xf32>
    tpu.vector_store %arg8[%c19, %c0_10], %30 {strides = array<i32>} : memref<36x64xf32, #tpu.memory_space<vmem>>, vector<16x64xf32>,
    %c0_11 = arith.constant 0 : index
    %c0_12 = arith.constant 0 : index
    %32 = vector.load %arg8[%c0_11, %c0_12] : memref<36x64xf32, #tpu.memory_space<vmem>>, vector<34x64xf32>
    %c0_13 = arith.constant 0 : index
    %c0_14 = arith.constant 0 : index
    %33 = vector.load %arg1[%c0_13, %c0_14] : memref<192x64xf32, #tpu.memory_space<vmem>>, vector<64x64xf32>
    %cst_15 = arith.constant dense<0.000000e+00> : vector<34x64xf32>
    %34 = tpu.matmul %32, %33, %cst_15 {dimension_numbers = #tpu.dot_dimension_numbers<[1], [0], [0], [1], [0, 0, 1, 1], [], []>} : vector<34x64xf32>, vector<64x64xf32>, vector<34x64xf32> -> vector<34x64xf32>
    %c1_16 = arith.constant 1 : index
    %c0_17 = arith.constant 0 : index
    %35 = vector.load %arg8[%c1_16, %c0_17] : memref<36x64xf32, #tpu.memory_space<vmem>>, vector<34x64xf32>
    %c64 = arith.constant 64 : index
    %c0_18 = arith.constant 0 : index
    %36 = vector.load %arg1[%c64, %c0_18] : memref<192x64xf32, #tpu.memory_space<vmem>>, vector<64x64xf32>
    %cst_19 = arith.constant dense<0.000000e+00> : vector<34x64xf32>
    %37 = tpu.matmul %35, %36, %cst_19 {dimension_numbers = #tpu.dot_dimension_numbers<[1], [0], [0], [1], [0, 0, 1, 1], [], []>} : vector<34x64xf32>, vector<64x64xf32>, vector<34x64xf32> -> vector<34x64xf32>
    %38 = arith.addf %34, %37 : vector<34x64xf32>
    %c2 = arith.constant 2 : index
    %c0_20 = arith.constant 0 : index
    %39 = vector.load %arg8[%c2, %c0_20] : memref<36x64xf32, #tpu.memory_space<vmem>>, vector<34x64xf32>
    %c128 = arith.constant 128 : index
    %c0_21 = arith.constant 0 : index
    %40 = vector.load %arg1[%c128, %c0_21] : memref<192x64xf32, #tpu.memory_space<vmem>>, vector<64x64xf32>
    %cst_22 = arith.constant dense<0.000000e+00> : vector<34x64xf32>
    %41 = tpu.matmul %39, %40, %cst_22 {dimension_numbers = #tpu.dot_dimension_numbers<[1], [0], [0], [1], [0, 0, 1, 1], [], []>} : vector<34x64xf32>, vector<64x64xf32>, vector<34x64xf32> -> vector<34x64xf32>
    %42 = arith.addf %38, %41 : vector<34x64xf32>
    %43 = tpu.iota {dimensions = array<i32: 0>} : vector<64x4xi32>
    %c4_i32 = arith.constant 4 : i32
    %c0_i32_23 = arith.constant 0 : i32
    %44 = arith.cmpi eq, %c4_i32, %c0_i32_23 : i32
    %c1_i32_24 = arith.constant 1 : i32
    %45 = arith.select %44, %c1_i32_24, %c4_i32 : i32
    %46 = vector.broadcast %45 : i32 to vector<64x4xi32>
    %47 = arith.remsi %43, %46 : vector<64x4xi32>
    %c0_i32_25 = arith.constant 0 : i32
    %48 = vector.broadcast %c0_i32_25 : i32 to vector<64x4xi32>
    %49 = arith.cmpi ne, %47, %48 : vector<64x4xi32>
    %c0_i32_26 = arith.constant 0 : i32
    %50 = vector.broadcast %c0_i32_26 : i32 to vector<64x4xi32>
    %51 = arith.cmpi slt, %47, %50 : vector<64x4xi32>
    %c0_i32_27 = arith.constant 0 : i32
    %52 = arith.cmpi slt, %45, %c0_i32_27 : i32
    %53 = vector.broadcast %52 : i1 to vector<64x4xi1>
    %54 = vector.broadcast %53 : vector<64x4xi1> to vector<64x4xi1>
    %55 = arith.xori %51, %54 : vector<64x4xi1>
    %56 = arith.andi %55, %49 : vector<64x4xi1>
    %57 = vector.broadcast %45 : i32 to vector<64x4xi32>
    %58 = arith.addi %47, %57 : vector<64x4xi32>
    %59 = arith.select %56, %58, %47 : vector<64x4xi1>, vector<64x4xi32>
    %60 = tpu.iota {dimensions = array<i32: 1>} : vector<64x4xi32>
    %61 = arith.cmpi eq, %59, %60 : vector<64x4xi32>
    %62 = arith.extui %61 : vector<64x4xi1> to vector<64x4xi32>
    %63 = arith.sitofp %62 : vector<64x4xi32> to vector<64x4xf32>
    %64 = tpu.iota {dimensions = array<i32: 0>} : vector<4x64xi32>
    %65 = tpu.iota {dimensions = array<i32: 1>} : vector<4x64xi32>
    %c4_i32_28 = arith.constant 4 : i32
    %c0_i32_29 = arith.constant 0 : i32
    %66 = arith.cmpi eq, %c4_i32_28, %c0_i32_29 : i32
    %c1_i32_30 = arith.constant 1 : i32
    %67 = arith.select %66, %c1_i32_30, %c4_i32_28 : i32
    %68 = vector.broadcast %67 : i32 to vector<4x64xi32>
    %69 = arith.remsi %65, %68 : vector<4x64xi32>
    %c0_i32_31 = arith.constant 0 : i32
    %70 = vector.broadcast %c0_i32_31 : i32 to vector<4x64xi32>
    %71 = arith.cmpi ne, %69, %70 : vector<4x64xi32>
    %c0_i32_32 = arith.constant 0 : i32
    %72 = vector.broadcast %c0_i32_32 : i32 to vector<4x64xi32>
    %73 = arith.cmpi slt, %69, %72 : vector<4x64xi32>
    %c0_i32_33 = arith.constant 0 : i32
    %74 = arith.cmpi slt, %67, %c0_i32_33 : i32
    %75 = vector.broadcast %74 : i1 to vector<4x64xi1>
    %76 = vector.broadcast %75 : vector<4x64xi1> to vector<4x64xi1>
    %77 = arith.xori %73, %76 : vector<4x64xi1>
    %78 = arith.andi %77, %71 : vector<4x64xi1>
    %79 = vector.broadcast %67 : i32 to vector<4x64xi32>
    %80 = arith.addi %69, %79 : vector<4x64xi32>
    %81 = arith.select %78, %80, %69 : vector<4x64xi1>, vector<4x64xi32>
    %82 = arith.cmpi eq, %64, %81 : vector<4x64xi32>
    %83 = arith.extui %82 : vector<4x64xi1> to vector<4x64xi32>
    %84 = arith.sitofp %83 : vector<4x64xi32> to vector<4x64xf32>
    %cst_34 = arith.constant dense<0.000000e+00> : vector<1x64xf32>
    %85 = tpu.matmul %25, %42, %cst_34 {dimension_numbers = #tpu.dot_dimension_numbers<[1], [0], [0], [1], [0, 0, 1, 1], [], []>} : vector<1x34xf32>, vector<34x64xf32>, vector<1x64xf32> -> vector<1x64xf32>
    %cst_35 = arith.constant dense<0.000000e+00> : vector<1x4xf32>
    %86 = tpu.matmul %85, %63, %cst_35 {dimension_numbers = #tpu.dot_dimension_numbers<[1], [0], [0], [1], [0, 0, 1, 1], [], []>} : vector<1x64xf32>, vector<64x4xf32>, vector<1x4xf32> -> vector<1x4xf32>
    %cst_36 = arith.constant 0.001953125 : f32
    %87 = vector.broadcast %cst_36 : f32 to vector<1x4xf32>
    %88 = arith.mulf %86, %87 : vector<1x4xf32>
    %cst_37 = arith.constant dense<0.000000e+00> : vector<1x64xf32>
    %89 = tpu.matmul %88, %84, %cst_37 {dimension_numbers = #tpu.dot_dimension_numbers<[1], [0], [0], [1], [0, 0, 1, 1], [], []>} : vector<1x4xf32>, vector<4x64xf32>, vector<1x64xf32> -> vector<1x64xf32>
    %90 = vector.broadcast %89 : vector<1x64xf32> to vector<34x64xf32>
    %91 = arith.subf %42, %90 : vector<34x64xf32>
    %92 = arith.mulf %91, %91 : vector<34x64xf32>
    %cst_38 = arith.constant dense<0.000000e+00> : vector<1x64xf32>
    %93 = tpu.matmul %25, %92, %cst_38 {dimension_numbers = #tpu.dot_dimension_numbers<[1], [0], [0], [1], [0, 0, 1, 1], [], []>} : vector<1x34xf32>, vector<34x64xf32>, vector<1x64xf32> -> vector<1x64xf32>
    %cst_39 = arith.constant dense<0.000000e+00> : vector<1x4xf32>
    %94 = tpu.matmul %93, %63, %cst_39 {dimension_numbers = #tpu.dot_dimension_numbers<[1], [0], [0], [1], [0, 0, 1, 1], [], []>} : vector<1x64xf32>, vector<64x4xf32>, vector<1x4xf32> -> vector<1x4xf32>
    %cst_40 = arith.constant 0.001953125 : f32
    %95 = vector.broadcast %cst_40 : f32 to vector<1x4xf32>
    %96 = arith.mulf %94, %95 : vector<1x4xf32>
    %c0_41 = arith.constant 0 : index
    %c0_42 = arith.constant 0 : index
    %97 = vector.load %arg2[%c0_41, %c0_42] : memref<1x4xf32, #tpu.memory_space<vmem>>, vector<1x4xf32>
    %cst_43 = arith.constant 9.99999974E-6 : f32
    %98 = vector.broadcast %cst_43 : f32 to vector<1x4xf32>
    %99 = arith.addf %96, %98 : vector<1x4xf32>
    %100 = math.rsqrt %99 : vector<1x4xf32>
    %101 = arith.mulf %97, %100 : vector<1x4xf32>
    %c0_44 = arith.constant 0 : index
    %c0_45 = arith.constant 0 : index
    %102 = vector.load %arg3[%c0_44, %c0_45] : memref<1x4xf32, #tpu.memory_space<vmem>>, vector<1x4xf32>
    %103 = arith.mulf %88, %101 : vector<1x4xf32>
    %104 = arith.subf %102, %103 : vector<1x4xf32>
    %cst_46 = arith.constant dense<0.000000e+00> : vector<1x64xf32>
    %105 = tpu.matmul %101, %84, %cst_46 {dimension_numbers = #tpu.dot_dimension_numbers<[1], [0], [0], [1], [0, 0, 1, 1], [], []>} : vector<1x4xf32>, vector<4x64xf32>, vector<1x64xf32> -> vector<1x64xf32>
    %cst_47 = arith.constant dense<0.000000e+00> : vector<1x64xf32>
    %106 = tpu.matmul %104, %84, %cst_47 {dimension_numbers = #tpu.dot_dimension_numbers<[1], [0], [0], [1], [0, 0, 1, 1], [], []>} : vector<1x4xf32>, vector<4x64xf32>, vector<1x64xf32> -> vector<1x64xf32>
    %107 = vector.broadcast %105 : vector<1x64xf32> to vector<34x64xf32>
    %108 = arith.mulf %42, %107 : vector<34x64xf32>
    %109 = vector.broadcast %106 : vector<1x64xf32> to vector<34x64xf32>
    %110 = arith.addf %108, %109 : vector<34x64xf32>
    %cst_48 = arith.constant 0.000000e+00 : f32
    %111 = vector.broadcast %cst_48 : f32 to vector<34x64xf32>
    %112 = arith.maximumf %110, %111 : vector<34x64xf32>
    %cst_49 = arith.constant 0.000000e+00 : f32
    %113 = vector.broadcast %cst_49 : f32 to vector<36x64xf32>
    %c0_50 = arith.constant 0 : index
    %c0_51 = arith.constant 0 : index
    %114 = vector.load %arg9[%c0_50, %c0_51] : memref<36x64xf32, #tpu.memory_space<vmem>>, vector<36x64xf32>
    tpu.vector_store %arg9[%c0_50, %c0_51], %113 {strides = array<i32>} : memref<36x64xf32, #tpu.memory_space<vmem>>, vector<36x64xf32>,
    %115 = vector.extract_strided_slice %112 {offsets = [0, 0], sizes = [16, 64], strides = [1, 1]} : vector<34x64xf32> to vector<16x64xf32>
    %c1_52 = arith.constant 1 : index
    %c0_53 = arith.constant 0 : index
    %116 = vector.load %arg9[%c1_52, %c0_53] : memref<36x64xf32, #tpu.memory_space<vmem>>, vector<16x64xf32>
    tpu.vector_store %arg9[%c1_52, %c0_53], %115 {strides = array<i32>} : memref<36x64xf32, #tpu.memory_space<vmem>>, vector<16x64xf32>,
    %117 = vector.extract_strided_slice %112 {offsets = [18, 0], sizes = [16, 64], strides = [1, 1]} : vector<34x64xf32> to vector<16x64xf32>
    %c19_54 = arith.constant 19 : index
    %c0_55 = arith.constant 0 : index
    %118 = vector.load %arg9[%c19_54, %c0_55] : memref<36x64xf32, #tpu.memory_space<vmem>>, vector<16x64xf32>
    tpu.vector_store %arg9[%c19_54, %c0_55], %117 {strides = array<i32>} : memref<36x64xf32, #tpu.memory_space<vmem>>, vector<16x64xf32>,
    %c0_56 = arith.constant 0 : index
    %c0_57 = arith.constant 0 : index
    %119 = vector.load %arg9[%c0_56, %c0_57] : memref<36x64xf32, #tpu.memory_space<vmem>>, vector<34x64xf32>
    %c0_58 = arith.constant 0 : index
    %c0_59 = arith.constant 0 : index
    %120 = vector.load %arg4[%c0_58, %c0_59] : memref<192x64xf32, #tpu.memory_space<vmem>>, vector<64x64xf32>
    %cst_60 = arith.constant dense<0.000000e+00> : vector<34x64xf32>
    %121 = tpu.matmul %119, %120, %cst_60 {dimension_numbers = #tpu.dot_dimension_numbers<[1], [0], [0], [1], [0, 0, 1, 1], [], []>} : vector<34x64xf32>, vector<64x64xf32>, vector<34x64xf32> -> vector<34x64xf32>
    %c1_61 = arith.constant 1 : index
    %c0_62 = arith.constant 0 : index
    %122 = vector.load %arg9[%c1_61, %c0_62] : memref<36x64xf32, #tpu.memory_space<vmem>>, vector<34x64xf32>
    %c64_63 = arith.constant 64 : index
    %c0_64 = arith.constant 0 : index
    %123 = vector.load %arg4[%c64_63, %c0_64] : memref<192x64xf32, #tpu.memory_space<vmem>>, vector<64x64xf32>
    %cst_65 = arith.constant dense<0.000000e+00> : vector<34x64xf32>
    %124 = tpu.matmul %122, %123, %cst_65 {dimension_numbers = #tpu.dot_dimension_numbers<[1], [0], [0], [1], [0, 0, 1, 1], [], []>} : vector<34x64xf32>, vector<64x64xf32>, vector<34x64xf32> -> vector<34x64xf32>
    %125 = arith.addf %121, %124 : vector<34x64xf32>
    %c2_66 = arith.constant 2 : index
    %c0_67 = arith.constant 0 : index
    %126 = vector.load %arg9[%c2_66, %c0_67] : memref<36x64xf32, #tpu.memory_space<vmem>>, vector<34x64xf32>
    %c128_68 = arith.constant 128 : index
    %c0_69 = arith.constant 0 : index
    %127 = vector.load %arg4[%c128_68, %c0_69] : memref<192x64xf32, #tpu.memory_space<vmem>>, vector<64x64xf32>
    %cst_70 = arith.constant dense<0.000000e+00> : vector<34x64xf32>
    %128 = tpu.matmul %126, %127, %cst_70 {dimension_numbers = #tpu.dot_dimension_numbers<[1], [0], [0], [1], [0, 0, 1, 1], [], []>} : vector<34x64xf32>, vector<64x64xf32>, vector<34x64xf32> -> vector<34x64xf32>
    %129 = arith.addf %125, %128 : vector<34x64xf32>
    %130 = tpu.iota {dimensions = array<i32: 0>} : vector<64x4xi32>
    %c4_i32_71 = arith.constant 4 : i32
    %c0_i32_72 = arith.constant 0 : i32
    %131 = arith.cmpi eq, %c4_i32_71, %c0_i32_72 : i32
    %c1_i32_73 = arith.constant 1 : i32
    %132 = arith.select %131, %c1_i32_73, %c4_i32_71 : i32
    %133 = vector.broadcast %132 : i32 to vector<64x4xi32>
    %134 = arith.remsi %130, %133 : vector<64x4xi32>
    %c0_i32_74 = arith.constant 0 : i32
    %135 = vector.broadcast %c0_i32_74 : i32 to vector<64x4xi32>
    %136 = arith.cmpi ne, %134, %135 : vector<64x4xi32>
    %c0_i32_75 = arith.constant 0 : i32
    %137 = vector.broadcast %c0_i32_75 : i32 to vector<64x4xi32>
    %138 = arith.cmpi slt, %134, %137 : vector<64x4xi32>
    %c0_i32_76 = arith.constant 0 : i32
    %139 = arith.cmpi slt, %132, %c0_i32_76 : i32
    %140 = vector.broadcast %139 : i1 to vector<64x4xi1>
    %141 = vector.broadcast %140 : vector<64x4xi1> to vector<64x4xi1>
    %142 = arith.xori %138, %141 : vector<64x4xi1>
    %143 = arith.andi %142, %136 : vector<64x4xi1>
    %144 = vector.broadcast %132 : i32 to vector<64x4xi32>
    %145 = arith.addi %134, %144 : vector<64x4xi32>
    %146 = arith.select %143, %145, %134 : vector<64x4xi1>, vector<64x4xi32>
    %147 = tpu.iota {dimensions = array<i32: 1>} : vector<64x4xi32>
    %148 = arith.cmpi eq, %146, %147 : vector<64x4xi32>
    %149 = arith.extui %148 : vector<64x4xi1> to vector<64x4xi32>
    %150 = arith.sitofp %149 : vector<64x4xi32> to vector<64x4xf32>
    %151 = tpu.iota {dimensions = array<i32: 0>} : vector<4x64xi32>
    %152 = tpu.iota {dimensions = array<i32: 1>} : vector<4x64xi32>
    %c4_i32_77 = arith.constant 4 : i32
    %c0_i32_78 = arith.constant 0 : i32
    %153 = arith.cmpi eq, %c4_i32_77, %c0_i32_78 : i32
    %c1_i32_79 = arith.constant 1 : i32
    %154 = arith.select %153, %c1_i32_79, %c4_i32_77 : i32
    %155 = vector.broadcast %154 : i32 to vector<4x64xi32>
    %156 = arith.remsi %152, %155 : vector<4x64xi32>
    %c0_i32_80 = arith.constant 0 : i32
    %157 = vector.broadcast %c0_i32_80 : i32 to vector<4x64xi32>
    %158 = arith.cmpi ne, %156, %157 : vector<4x64xi32>
    %c0_i32_81 = arith.constant 0 : i32
    %159 = vector.broadcast %c0_i32_81 : i32 to vector<4x64xi32>
    %160 = arith.cmpi slt, %156, %159 : vector<4x64xi32>
    %c0_i32_82 = arith.constant 0 : i32
    %161 = arith.cmpi slt, %154, %c0_i32_82 : i32
    %162 = vector.broadcast %161 : i1 to vector<4x64xi1>
    %163 = vector.broadcast %162 : vector<4x64xi1> to vector<4x64xi1>
    %164 = arith.xori %160, %163 : vector<4x64xi1>
    %165 = arith.andi %164, %158 : vector<4x64xi1>
    %166 = vector.broadcast %154 : i32 to vector<4x64xi32>
    %167 = arith.addi %156, %166 : vector<4x64xi32>
    %168 = arith.select %165, %167, %156 : vector<4x64xi1>, vector<4x64xi32>
    %169 = arith.cmpi eq, %151, %168 : vector<4x64xi32>
    %170 = arith.extui %169 : vector<4x64xi1> to vector<4x64xi32>
    %171 = arith.sitofp %170 : vector<4x64xi32> to vector<4x64xf32>
    %cst_83 = arith.constant dense<0.000000e+00> : vector<1x64xf32>
    %172 = tpu.matmul %25, %129, %cst_83 {dimension_numbers = #tpu.dot_dimension_numbers<[1], [0], [0], [1], [0, 0, 1, 1], [], []>} : vector<1x34xf32>, vector<34x64xf32>, vector<1x64xf32> -> vector<1x64xf32>
    %cst_84 = arith.constant dense<0.000000e+00> : vector<1x4xf32>
    %173 = tpu.matmul %172, %150, %cst_84 {dimension_numbers = #tpu.dot_dimension_numbers<[1], [0], [0], [1], [0, 0, 1, 1], [], []>} : vector<1x64xf32>, vector<64x4xf32>, vector<1x4xf32> -> vector<1x4xf32>
    %cst_85 = arith.constant 0.001953125 : f32
    %174 = vector.broadcast %cst_85 : f32 to vector<1x4xf32>
    %175 = arith.mulf %173, %174 : vector<1x4xf32>
    %cst_86 = arith.constant dense<0.000000e+00> : vector<1x64xf32>
    %176 = tpu.matmul %175, %171, %cst_86 {dimension_numbers = #tpu.dot_dimension_numbers<[1], [0], [0], [1], [0, 0, 1, 1], [], []>} : vector<1x4xf32>, vector<4x64xf32>, vector<1x64xf32> -> vector<1x64xf32>
    %177 = vector.broadcast %176 : vector<1x64xf32> to vector<34x64xf32>
    %178 = arith.subf %129, %177 : vector<34x64xf32>
    %179 = arith.mulf %178, %178 : vector<34x64xf32>
    %cst_87 = arith.constant dense<0.000000e+00> : vector<1x64xf32>
    %180 = tpu.matmul %25, %179, %cst_87 {dimension_numbers = #tpu.dot_dimension_numbers<[1], [0], [0], [1], [0, 0, 1, 1], [], []>} : vector<1x34xf32>, vector<34x64xf32>, vector<1x64xf32> -> vector<1x64xf32>
    %cst_88 = arith.constant dense<0.000000e+00> : vector<1x4xf32>
    %181 = tpu.matmul %180, %150, %cst_88 {dimension_numbers = #tpu.dot_dimension_numbers<[1], [0], [0], [1], [0, 0, 1, 1], [], []>} : vector<1x64xf32>, vector<64x4xf32>, vector<1x4xf32> -> vector<1x4xf32>
    %cst_89 = arith.constant 0.001953125 : f32
    %182 = vector.broadcast %cst_89 : f32 to vector<1x4xf32>
    %183 = arith.mulf %181, %182 : vector<1x4xf32>
    %c0_90 = arith.constant 0 : index
    %c0_91 = arith.constant 0 : index
    %184 = vector.load %arg5[%c0_90, %c0_91] : memref<1x4xf32, #tpu.memory_space<vmem>>, vector<1x4xf32>
    %cst_92 = arith.constant 9.99999974E-6 : f32
    %185 = vector.broadcast %cst_92 : f32 to vector<1x4xf32>
    %186 = arith.addf %183, %185 : vector<1x4xf32>
    %187 = math.rsqrt %186 : vector<1x4xf32>
    %188 = arith.mulf %184, %187 : vector<1x4xf32>
    %c0_93 = arith.constant 0 : index
    %c0_94 = arith.constant 0 : index
    %189 = vector.load %arg6[%c0_93, %c0_94] : memref<1x4xf32, #tpu.memory_space<vmem>>, vector<1x4xf32>
    %190 = arith.mulf %175, %188 : vector<1x4xf32>
    %191 = arith.subf %189, %190 : vector<1x4xf32>
    %cst_95 = arith.constant dense<0.000000e+00> : vector<1x64xf32>
    %192 = tpu.matmul %188, %171, %cst_95 {dimension_numbers = #tpu.dot_dimension_numbers<[1], [0], [0], [1], [0, 0, 1, 1], [], []>} : vector<1x4xf32>, vector<4x64xf32>, vector<1x64xf32> -> vector<1x64xf32>
    %cst_96 = arith.constant dense<0.000000e+00> : vector<1x64xf32>
    %193 = tpu.matmul %191, %171, %cst_96 {dimension_numbers = #tpu.dot_dimension_numbers<[1], [0], [0], [1], [0, 0, 1, 1], [], []>} : vector<1x4xf32>, vector<4x64xf32>, vector<1x64xf32> -> vector<1x64xf32>
    %194 = vector.broadcast %192 : vector<1x64xf32> to vector<34x64xf32>
    %195 = arith.mulf %129, %194 : vector<34x64xf32>
    %196 = vector.broadcast %193 : vector<1x64xf32> to vector<34x64xf32>
    %197 = arith.addf %195, %196 : vector<34x64xf32>
    %198 = vector.extract_strided_slice %197 {offsets = [0, 0], sizes = [16, 64], strides = [1, 1]} : vector<34x64xf32> to vector<16x64xf32>
    %c0_97 = arith.constant 0 : index
    %c0_98 = arith.constant 0 : index
    %199 = vector.load %arg0[%c0_97, %c0_98] : memref<32x64xf32, #tpu.memory_space<vmem>>, vector<16x64xf32>
    %200 = arith.addf %198, %199 : vector<16x64xf32>
    %cst_99 = arith.constant 0.000000e+00 : f32
    %201 = vector.broadcast %cst_99 : f32 to vector<16x64xf32>
    %202 = arith.maximumf %200, %201 : vector<16x64xf32>
    %c0_100 = arith.constant 0 : index
    %c0_101 = arith.constant 0 : index
    %203 = vector.load %arg7[%c0_100, %c0_101] : memref<32x64xf32, #tpu.memory_space<vmem>>, vector<16x64xf32>
    tpu.vector_store %arg7[%c0_100, %c0_101], %202 {strides = array<i32>} : memref<32x64xf32, #tpu.memory_space<vmem>>, vector<16x64xf32>,
    %204 = vector.extract_strided_slice %197 {offsets = [18, 0], sizes = [16, 64], strides = [1, 1]} : vector<34x64xf32> to vector<16x64xf32>
    %c16_102 = arith.constant 16 : index
    %c0_103 = arith.constant 0 : index
    %205 = vector.load %arg0[%c16_102, %c0_103] : memref<32x64xf32, #tpu.memory_space<vmem>>, vector<16x64xf32>
    %206 = arith.addf %204, %205 : vector<16x64xf32>
    %cst_104 = arith.constant 0.000000e+00 : f32
    %207 = vector.broadcast %cst_104 : f32 to vector<16x64xf32>
    %208 = arith.maximumf %206, %207 : vector<16x64xf32>
    %c16_105 = arith.constant 16 : index
    %c0_106 = arith.constant 0 : index
    %209 = vector.load %arg7[%c16_105, %c0_106] : memref<32x64xf32, #tpu.memory_space<vmem>>, vector<16x64xf32>
    tpu.vector_store %arg7[%c16_105, %c0_106], %208 {strides = array<i32>} : memref<32x64xf32, #tpu.memory_space<vmem>>, vector<16x64xf32>,
    return
  }
}

</mosaic_0001>

<bundles_post_ra>
// kernel: basic_block_2d.1
= control target key start
LH: loop header
LB: loop body
LE: loop exit
PB: predicated region body
PF: predicated region fallthrough
CT: control target
= control target key end

     0   :  { %v2913_v3 = vmov 0.0|0.0   ;;  %vm2914_vm0 = vmmov 0   ;;  %v2915_v6 = vmov 0.0   ;;  %vm51_vm1 = vcmask 523264   ;;  %s3555_s0 = inlined_call_operand.vmem [shape: f32[32,64], index: 0, kind: input, shape index: {}]   ;;  %s3556_s1 = inlined_call_operand.vmem [shape: f32[192,64], index: 1, kind: input, shape index: {}]   ;;  %s3557_s2 = inlined_call_operand.vmem [shape: f32[1,4], index: 2, kind: input, shape index: {}]   ;;  %s3558_s3 = inlined_call_operand.vmem [shape: f32[1,4], index: 3, kind: input, shape index: {}]   ;;  %s3559_s4 = inlined_call_operand.vmem [shape: f32[192,64], index: 4, kind: input, shape index: {}]   ;;  %s3560_s5 = inlined_call_operand.vmem [shape: f32[1,4], index: 5, kind: input, shape index: {}]   ;;  %s3561_s6 = inlined_call_operand.vmem [shape: f32[1,4], index: 6, kind: input, shape index: {}]   ;;  %s3562_s7 = inlined_call_operand.hbm [shape: f32[32,64], index: 7, kind: output, shape index: {}]  }
   0x1   :  { %v84_v0 = vld [vmem:[%s3556_s1 + $0x40] sm:$0xff]  ;;  %v85_v1 = vld [vmem:[%s3556_s1 + $0x48] sm:$0xff]  ;;  %v86_v2 = vld [vmem:[%s3556_s1 + $0x50] sm:$0xff]  ;;  %2692 = vmatprep.subr.bf16.mxu0 %v2913_v3  ;;  %2364 = vmatprep.mubr.msk.f32.mxu0 %vm2914_vm0, %v2915_v6  ;;  %vm56_vm2 = vcmask 519168   ;;  %52 = vst.msk [vmem:[#allocation2] sm:$0xff] %vm51_vm1, %v2915_v6 }
   0x2   :  { %v2693_v4 = vpack.c.bf16 %v85_v1, %v84_v0  ;;  %v87_v5 = vld [vmem:[%s3556_s1 + $0x58] sm:$0xff]  ;;  %53 = vst.msk [vmem:[#allocation2 + $0x8] sm:$0xff] %vm51_vm1, %v2915_v6  ;;  %v2982_v7 = vld [vmem:[%s3555_s0] sm:$0xff]  ;;  %54 = vst.msk [vmem:[#allocation2 + $0x10] sm:$0xff] %vm51_vm1, %v2915_v6  ;;  %2728 = vmatprep.subr.bf16.mxu1 %v2913_v3  ;;  %2451 = vmatprep.mubr.msk.f32.mxu1 %vm2914_vm0, %v2915_v6 }
   0x3   :  { %55 = vst.msk [vmem:[#allocation2 + $0x18] sm:$0xff] %vm51_vm1, %v2915_v6  ;;  %1136 = vst.msk [vmem:[#allocation3] sm:$0xff] %vm51_vm1, %v2915_v6  ;;  %v2696_v8 = vpack.c.bf16 %v87_v5, %v86_v2  ;;  %v3006_v9 = vld [vmem:[%s3555_s0 + $0x8] sm:$0xff]  ;;  %v88_v10 = vld [vmem:[%s3556_s1 + $0x60] sm:$0xff] }
   0x4   :  { %1137 = vst.msk [vmem:[#allocation3 + $0x8] sm:$0xff] %vm51_vm1, %v2915_v6  ;;  %1138 = vst.msk [vmem:[#allocation3 + $0x10] sm:$0xff] %vm51_vm1, %v2915_v6  ;;  %2694 = vmatpush3.bf16.msra.mxu0 %v2693_v4  ;;  %v89_v11 = vld [vmem:[%s3556_s1 + $0x68] sm:$0xff]  ;;  %v3020_v12 = vld [vmem:[%s3555_s0 + $0x10] sm:$0xff] }
   0x5   :  { %1139 = vst.msk [vmem:[#allocation3 + $0x18] sm:$0xff] %vm51_vm1, %v2915_v6  ;;  %60 = vst.msk [vmem:[#allocation2 + $0x1] sm:$0xff] %vm51_vm1, %v2982_v7  ;;  %2695 = vmatprep.subr.bf16.mxu0 %v2913_v3  ;;  %v3027_v13 = vld [vmem:[%s3555_s0 + $0x18] sm:$0xff]  ;;  %v2699_v14 = vpack.c.bf16 %v89_v11, %v88_v10  ;;  %v90_v15 = vld [vmem:[%s3556_s1 + $0x70] sm:$0xff] }
   0x6   :  { %57 = vst.msk [vmem:[#allocation2 + $0x20] sm:$0xf] %vm56_vm2, %v2915_v6  ;;  %1140 = vst.msk [vmem:[#allocation3 + $0x20] sm:$0xf] %vm56_vm2, %v2915_v6  ;;  %v91_v16 = vld [vmem:[%s3556_s1 + $0x78] sm:$0xff] }
   0x7   :  { %61 = vst.msk [vmem:[#allocation2 + $0x9] sm:$0xff] %vm51_vm1, %v3006_v9  ;;  %64 = vst.msk [vmem:[#allocation2 + $0x13] sm:$0xff] %vm51_vm1, %v3020_v12 }
   0x8   :  { %65 = vst.msk [vmem:[#allocation2 + $0x1b] sm:$0xff] %vm51_vm1, %v3027_v13  ;;  %2697 = vmatpush3.bf16.msra.mxu0 %v2696_v8 }
   0x9   :  { %2698 = vmatprep.subr.bf16.mxu0 %v2913_v3 }
   0xa   :  { %12 = vsyncpa [#allocation5], 0  ;;  %v2702_v17 = vpack.c.bf16 %v91_v16, %v90_v15  ;;  %v71_v18 = vld [vmem:[%s3556_s1] sm:$0xff]  ;;  %v72_v19 = vld [vmem:[%s3556_s1 + $0x8] sm:$0xff]  ;;  %v27_v57 = vlaneseq  ;;  %vm573_vm11 = vcmask 1041408   ;;  %vm569_vm12 = vcmask 277504  }
   0xb   :  { %v2705_v21 = vpack.c.bf16 %v72_v19, %v71_v18  ;;  %v73_v22 = vld [vmem:[%s3556_s1 + $0x10] sm:$0xff]  ;;  %v74_v23 = vld [vmem:[%s3556_s1 + $0x18] sm:$0xff]  ;;  %v75_v26 = vld [vmem:[%s3556_s1 + $0x20] sm:$0xff] }
   0xc   :  { %2700 = vmatpush3.bf16.msra.mxu0 %v2699_v14  ;;  %v79_v20 = vld [vmem:[#allocation2 + $0x1] sm:$0xff]  ;;  %v2708_v25 = vpack.c.bf16 %v74_v23, %v73_v22  ;;  %v77_v30 = vld [vmem:[%s3556_s1 + $0x30] sm:$0xff]  ;;  %v78_v31 = vld [vmem:[%s3556_s1 + $0x38] sm:$0xff]  ;;  %v3141_v58 = vand.u32 127, %v27_v57  ;;  %v3150_v4 = vshrl.u32 %v27_v57, 7 }
   0xd   :  { %2701 = vmatprep.subr.bf16.mxu0 %v2913_v3  ;;  %v76_v27 = vld [vmem:[%s3556_s1 + $0x28] sm:$0xff]  ;;  %v2714_v33 = vpack.c.bf16 %v78_v31, %v77_v30  ;;  %v307_v35 = vld [vmem:[%s3556_s1 + $0x80] sm:$0xff]  ;;  %v309_v39 = vld [vmem:[%s3556_s1 + $0x90] sm:$0xff] }
   0xe   :  { %v80_v24 = vld [vmem:[#allocation2 + $0x9] sm:$0xff]  ;;  %v81_v28 = vld [vmem:[#allocation2 + $0x11] sm:$0xff]  ;;  %v2711_v29 = vpack.c.bf16 %v76_v27, %v75_v26  ;;  %v66_v37 = vld [vmem:[#allocation2] sm:$0xff]  ;;  %v29_v59 = vadd.s32 1, %v3141_v58  ;;  %v427_v14 = vadd.s32 8, %v3150_v4  ;;  %v428_v18 = vadd.s32 16, %v3150_v4 }
   0xf   :  { %v82_v32 = vld [vmem:[#allocation2 + $0x19] sm:$0xff]  ;;  %v83_v34 = vld [vmem:[#allocation2 + $0x21] sm:$0x3]  ;;  %v308_v36 = vld [vmem:[%s3556_s1 + $0x88] sm:$0xff]  ;;  %v429_v19 = vadd.s32 24, %v3150_v4  ;;  %v430_v27 = vadd.s32 32, %v3150_v4 }
  0x10   :  { %2703 = vmatpush3.bf16.msra.mxu0 %v2702_v17  ;;  %v2717_v38 = vpack.c.bf16 %v308_v36, %v307_v35  ;;  %v310_v40 = vld [vmem:[%s3556_s1 + $0x98] sm:$0xff]  ;;  %v67_v41 = vld [vmem:[#allocation2 + $0x8] sm:$0xff]  ;;  %v311_v43 = vld [vmem:[%s3556_s1 + $0xa0] sm:$0xff]  ;;  %v3144_v60 = vmul.u32.u64.low 3817748708, %v29_v59  ;;  %v3145_v61 = vmul.u32.u64.high 3817748708, %v29_v59, %v3144_v60  ;;  %v432_v35 = vadd.s32 48, %v3150_v4 }
  0x11   :  { %2704 = vmatprep.subr.bf16.mxu0 %v2913_v3  ;;  %v2720_v42 = vpack.c.bf16 %v310_v40, %v309_v39  ;;  %v312_v44 = vld [vmem:[%s3556_s1 + $0xa8] sm:$0xff]  ;;  %v68_v45 = vld [vmem:[#allocation2 + $0x10] sm:$0xff]  ;;  %v314_v48 = vld [vmem:[%s3556_s1 + $0xb8] sm:$0xff]  ;;  %v459_v26 = vand.u32 3, %v429_v19  ;;  %v433_v36 = vadd.s32 56, %v3150_v4 }
  0x12   :  { %v2723_v46 = vpack.c.bf16 %v312_v44, %v311_v43  ;;  %v313_v47 = vld [vmem:[%s3556_s1 + $0xb0] sm:$0xff]  ;;  %v69_v49 = vld [vmem:[#allocation2 + $0x18] sm:$0xff]  ;;  %v70_v51 = vld [vmem:[#allocation2 + $0x20] sm:$0x3]  ;;  %v36_v62 = vshrl.u32 %v3145_v61, 4  ;;  %v480_v39 = vand.u32 3, %v432_v35 }
  0x13   :  { %2365 = vmatmul.mubr.msk.f32.vlgmr.msra.gmra.mrb[0].mxu0 %vm51_vm1, %v79_v20  ;;  %v2726_v50 = vpack.c.bf16 %v314_v48, %v313_v47  ;;  %v302_v52 = vld [vmem:[#allocation2 + $0x2] sm:$0xff]  ;;  %v303_v53 = vld [vmem:[#allocation2 + $0xa] sm:$0xff]  ;;  %v304_v54 = vld [vmem:[#allocation2 + $0x12] sm:$0xff]  ;;  %v438_v20 = vand.u32 3, %v3150_v4  ;;  %vm533_vm15 = vcmp.eq.s32.totalorder %v459_v26, %v3141_v58  ;;  %v487_v40 = vand.u32 3, %v433_v36 }
  0x14   :  { %2706 = vmatpush3.bf16.msra.mxu0 %v2705_v21  ;;  %2367 = vmatprep.mubr.msk.f32.mxu0 %vm2914_vm0, %v2915_v6  ;;  %v305_v55 = vld [vmem:[#allocation2 + $0x1a] sm:$0xff]  ;;  %v306_v56 = vld [vmem:[#allocation2 + $0x22] sm:$0x3]  ;;  %v37_v63 = vmul.u32 18, %v36_v62  ;;  %v445_v21 = vand.u32 3, %v427_v14  ;;  %v1172_v36 = vld [vmem:[%s3559_s4 + $0x70] sm:$0xff] }
  0x15   :  { %2707 = vmatprep.subr.bf16.mxu0 %v2913_v3  ;;  %vm530_vm9 = vcmp.eq.s32.totalorder %v438_v20, %v3141_v58  ;;  %v964_v20 = vld [vmem:[%s3558_s3] sm:$0x1] }
  0x16   :  { %v38_v0 = vsub.s32 %v29_v59, %v37_v63  ;;  %vm531_vm10 = vcmp.eq.s32.totalorder %v445_v21, %v3141_v58 }
  0x17   :  { %2368 = vmatmul.mubr.msk.f32.gmra.mrb[2].mxu0 %vm51_vm1, %v80_v24  ;;  %vm3177_vm13 = vmpackc.low %vm531_vm10, %vm530_vm9  ;;  %vm725_vm10 = vcmask 1043456  }
  0x18   :  { %2709 = vmatpush3.bf16.msra.mxu0 %v2708_v25  ;;  %2370 = vmatprep.mubr.msk.f32.mxu0 %vm2914_vm0, %v2915_v6  ;;  %vm41_vm3 = vcmp.ne.s32.totalorder %v38_v0, 0  ;;  %vm42_vm4 = vcmp.lt.s32.totalorder %v38_v0, 0  ;;  %v44_v8 = vadd.s32 18, %v38_v0  ;;  %v452_v25 = vand.u32 3, %v428_v18 }
  0x19   :  { %2710 = vmatprep.subr.bf16.mxu0 %v2913_v3  ;;  %vm43_vm5 = vmand %vm42_vm4, %vm41_vm3 }
  0x1a   :  { %v45_v16 = vsel %vm43_vm5, %v44_v8, %v38_v0  ;;  %vm532_vm14 = vcmp.eq.s32.totalorder %v452_v25, %v3141_v58  ;;  %v1167_v25 = vld [vmem:[%s3559_s4 + $0x48] sm:$0xff] }
  0x1b   :  { %2371 = vmatmul.mubr.msk.f32.gmra.mrb[4].mxu0 %vm51_vm1, %v81_v28  ;;  %vm46_vm6 = vcmp.ge.s32.totalorder %v45_v16, 1  ;;  %vm47_vm7 = vcmp.le.s32.totalorder %v45_v16, 16  ;;  %v431_v28 = vadd.s32 40, %v3150_v4  ;;  %vm3196_vm2 = vmpackc.low %vm533_vm15, %vm532_vm14  ;;  %vm721_vm14 = vcmask 31744  }
  0x1c   :  { %2373 = vmatprep.mubr.msk.f32.mxu0 %vm2914_vm0, %v2915_v6  ;;  %2712 = vmatpush3.bf16.msra.mxu0 %v2711_v29  ;;  %vm48_vm8 = vmand %vm46_vm6, %vm47_vm7  ;;  %vm536_vm6 = vcmp.eq.s32.totalorder %v480_v39, %v3141_v58  ;;  %vm537_vm7 = vcmp.eq.s32.totalorder %v487_v40, %v3141_v58  ;;  %v1173_v39 = vld [vmem:[%s3559_s4 + $0x78] sm:$0xff]  ;;  %vm1143_vm15 = vcmask 523266  }
  0x1d   :  { %2713 = vmatprep.subr.bf16.mxu0 %v2913_v3  ;;  %v3175_v31 = vsel %vm48_vm8, 1.0, %v2915_v6  ;;  %vm3216_vm8 = vmpackc.low %vm537_vm7, %vm536_vm6  ;;  %v2774_v40 = vpack.c.bf16 %v1173_v39, %v1172_v36 }
  0x1f   :  { %2374 = vmatmul.mubr.msk.f32.gmra.mrb[6].mxu0 %vm51_vm1, %v82_v32 }
  0x20   :  { %2376 = vmatprep.mubr.msk.f32.mxu0 %vm2914_vm0, %v2915_v6  ;;  %2715 = vmatpush3.bf16.msra.mxu0 %v2714_v33  ;;  %v466_v33 = vand.u32 3, %v430_v27  ;;  %v1168_v27 = vld [vmem:[%s3559_s4 + $0x50] sm:$0xff] }
  0x21   :  { %2716 = vmatprep.subr.bf16.mxu0 %v2913_v3 }
  0x22   :  { %vm534_vm3 = vcmp.eq.s32.totalorder %v466_v33, %v3141_v58  ;;  %v1170_v33 = vld [vmem:[%s3559_s4 + $0x60] sm:$0xff] }
  0x23   :  { %2377 = vmatmul.mubr.msk.f32.gmra.mrb[8].mxu0 %vm51_vm1, %v83_v34  ;;  %v473_v34 = vand.u32 3, %v431_v28  ;;  %v1169_v28 = vld [vmem:[%s3559_s4 + $0x58] sm:$0xff] }
  0x24   :  { %2395 = vmatprep.mubr.msk.f32.mxu0 %vm2914_vm0, %v2915_v6 }
  0x25   :  { %vm535_vm4 = vcmp.eq.s32.totalorder %v473_v34, %v3141_v58  ;;  %v1171_v34 = vld [vmem:[%s3559_s4 + $0x68] sm:$0xff] }
  0x26   :  { %vm3206_vm5 = vmpackc.low %vm535_vm4, %vm534_vm3  ;;  %v2771_v35 = vpack.c.bf16 %v1171_v34, %v1170_v33  ;;  %vm1146_vm3 = vcmask 517120   ;;  %v1393_v34 = vld [vmem:[%s3559_s4 + $0xa0] sm:$0xff] }
  0x27   :  { %2396 = vmatmul.mubr.msk.f32.vlgmr.msra.gmra.mrb[0].mxu0 %vm51_vm1, %v66_v37  ;;  %v2916_v37 = vmov 1.0|1.0  }
  0x28   :  { %2718 = vmatpush3.bf16.msra.mxu0 %v2717_v38  ;;  %2398 = vmatprep.mubr.msk.f32.mxu0 %vm2914_vm0, %v2915_v6 }
  0x29   :  { %2719 = vmatprep.subr.bf16.mxu0 %v2913_v3 }
  0x2b   :  { %2399 = vmatmul.mubr.msk.f32.gmra.mrb[2].mxu0 %vm51_vm1, %v67_v41 }
  0x2c   :  { %2721 = vmatpush3.bf16.msra.mxu0 %v2720_v42  ;;  %2401 = vmatprep.mubr.msk.f32.mxu0 %vm2914_vm0, %v2915_v6 }
  0x2d   :  { %2722 = vmatprep.subr.bf16.mxu0 %v2913_v3 }
  0x2f   :  { %2402 = vmatmul.mubr.msk.f32.gmra.mrb[4].mxu0 %vm51_vm1, %v68_v45  ;;  %v558_v45 = vand.u32 3, %v3141_v58 }
  0x30   :  { %2404 = vmatprep.mubr.msk.f32.mxu0 %vm2914_vm0, %v2915_v6  ;;  %2724 = vmatpush3.bf16.msra.mxu0 %v2723_v46 }
  0x31   :  { %2725 = vmatprep.subr.bf16.mxu0 %v2913_v3  ;;  %vm566_vm9 = vcmp.eq.s32.totalorder %v3150_v4, %v558_v45 }
  0x32   :  { %v3230_v46 = vsel %vm566_vm9, 1.0, %v2915_v6 }
  0x33   :  { %2405 = vmatmul.mubr.msk.f32.gmra.mrb[6].mxu0 %vm51_vm1, %v69_v49 }
  0x34   :  { %2407 = vmatprep.mubr.msk.f32.mxu0 %vm2914_vm0, %v2915_v6  ;;  %2727 = vmatpush3.bf16.msra.mxu0 %v2726_v50  ;;  %v3239_v50 = vsub.s32 0, %v3150_v4 }
  0x35   :  { %2764 = vmatprep.subr.bf16.mxu0 %v2913_v3 }
  0x37   :  { %2408 = vmatmul.mubr.msk.f32.gmra.mrb[8].mxu0 %vm51_vm1, %v70_v51 }
  0x38   :  { %2426 = vmatprep.mubr.msk.f32.mxu0 %vm2914_vm0, %v2915_v6 }
  0x3b   :  { %2427 = vmatmul.mubr.msk.f32.vlgmr.msra.gmra.mrb[0].mxu0 %vm51_vm1, %v302_v52 }
  0x3c   :  { %2429 = vmatprep.mubr.msk.f32.mxu0 %vm2914_vm0, %v2915_v6 }
  0x3f   :  { %2430 = vmatmul.mubr.msk.f32.gmra.mrb[2].mxu0 %vm51_vm1, %v303_v53 }
  0x40   :  { %2432 = vmatprep.mubr.msk.f32.mxu0 %vm2914_vm0, %v2915_v6 }
  0x43   :  { %2433 = vmatmul.mubr.msk.f32.gmra.mrb[4].mxu0 %vm51_vm1, %v304_v54 }
  0x44   :  { %2435 = vmatprep.mubr.msk.f32.mxu0 %vm2914_vm0, %v2915_v6 }
  0x47   :  { %2436 = vmatmul.mubr.msk.f32.gmra.mrb[6].mxu0 %vm51_vm1, %v305_v55 }
  0x48   :  { %2438 = vmatprep.mubr.msk.f32.mxu0 %vm2914_vm0, %v2915_v6 }
  0x4b   :  { %2439 = vmatmul.mubr.msk.f32.gmra.mrb[8].mxu0 %vm51_vm1, %v306_v56 }
  0x4c   :  { %2536 = vmatprep.mubr.msk.f32.mxu0 %vm2914_vm0, %v2915_v6 }
 0x10e   :  { %v3148_v1 = vpop.f32.mrb[0].mxu0 }
 0x10f   :  { %v2428_v2 = vpop.f32.mrb[1].mxu0 }
 0x112   :  { %v3152_v5 = vpop.f32.mrb[2].mxu0 }
 0x113   :  { %v2431_v10 = vpop.f32.mrb[3].mxu0  ;;  %v2729_v11 = vpack.c.bf16 %v3152_v5, %v3148_v1 }
 0x115   :  { %2730 = vmatpush3.bf16.msra.mxu1 %v2729_v11 }
 0x116   :  { %v3157_v15 = vpop.f32.mrb[4].mxu0  ;;  %2731 = vmatprep.subr.bf16.mxu1 %v2913_v3 }
 0x117   :  { %v2434_v17 = vpop.f32.mrb[5].mxu0 }
 0x118   :  { %v960_v17 = vld [vmem:[%s3557_s2] sm:$0x1] }
 0x11a   :  { %v3163_v22 = vpop.f32.mrb[6].mxu0 }
 0x11b   :  { %v2732_v23 = vpack.c.bf16 %v3163_v22, %v3157_v15  ;;  %v2437_v24 = vpop.f32.mrb[7].mxu0 }
 0x11c   :  { %v1166_v24 = vld [vmem:[%s3559_s4 + $0x40] sm:$0xff] }
 0x11d   :  { %2733 = vmatpush3.bf16.msra.mxu1 %v2732_v23  ;;  %v2765_v26 = vpack.c.bf16 %v1167_v25, %v1166_v24  ;;  %v1390_v24 = vld [vmem:[%s3559_s4 + $0x88] sm:$0xff] }
 0x11e   :  { %v3171_v29 = vpop.f32.mrb[8].mxu0  ;;  %2449 = vmatprep.subr.mxu1 %v2915_v6 }
 0x11f   :  { %v2440_v30 = vpop.f32.mrb[9].mxu0  ;;  %2766 = vmatpush3.bf16.msra.mxu0 %v2765_v26 }
 0x120   :  { %2767 = vmatprep.subr.bf16.mxu0 %v2913_v3  ;;  %v2768_v30 = vpack.c.bf16 %v1169_v28, %v1168_v27  ;;  %v1391_v27 = vld [vmem:[%s3559_s4 + $0x90] sm:$0xff]  ;;  %v1392_v28 = vld [vmem:[%s3559_s4 + $0x98] sm:$0xff] }
 0x121   :  { %2450 = vmatpush3.msk.msra.mxu1 %vm573_vm11, %v3171_v29  ;;  %v2792_v33 = vpack.c.bf16 %v1392_v28, %v1391_v27 }
 0x122   :  { %2452 = vmatmul.mubr.msk.f32.vlgmr.msra.gmra.mrb[0].mxu1 %vm569_vm12, %v3175_v31  ;;  %2734 = vmatprep.subr.bf16.mxu1 %v2913_v3 }
 0x123   :  { %2736 = vmatpush3.bf16.msk.msra.mxu1 %vm3177_vm13, %v2916_v37  ;;  %2470 = vmatprep.mubr.msk.f32.mxu1 %vm2914_vm0, %v2915_v6 }
 0x124   :  { %2737 = vmatprep.subr.bf16.mxu1 %v2913_v3  ;;  %2769 = vmatpush3.bf16.msra.mxu0 %v2768_v30 }
 0x125   :  { %2770 = vmatprep.subr.bf16.mxu0 %v2913_v3 }
 0x127   :  { %2739 = vmatpush3.bf16.msk.msra.mxu1 %vm3196_vm2, %v2916_v37 }
 0x128   :  { %2740 = vmatprep.subr.bf16.mxu1 %v2913_v3  ;;  %2772 = vmatpush3.bf16.msra.mxu0 %v2771_v35  ;;  %v1394_v35 = vld [vmem:[%s3559_s4 + $0xa8] sm:$0xff] }
 0x129   :  { %2773 = vmatprep.subr.bf16.mxu0 %v2913_v3  ;;  %v2795_v39 = vpack.c.bf16 %v1394_v35, %v1393_v34 }
 0x12b   :  { %2742 = vmatpush3.bf16.msk.msra.mxu1 %vm3206_vm5, %v2916_v37 }
 0x12c   :  { %2743 = vmatprep.subr.bf16.mxu1 %v2913_v3  ;;  %2775 = vmatpush3.bf16.msra.mxu0 %v2774_v40  ;;  %v1395_v40 = vld [vmem:[%s3559_s4 + $0xb0] sm:$0xff] }
 0x12d   :  { %2776 = vmatprep.subr.bf16.mxu0 %v2913_v3 }
 0x12f   :  { %2745 = vmatpush3.bf16.msk.msra.mxu1 %vm3216_vm8, %v2916_v37 }
 0x130   :  { %2473 = vmatprep.subr.mxu1 %v2915_v6 }
 0x1f5   :  { %v643_v43 = vpop.f32.mrb[0].mxu1 }
 0x1f6   :  { %v2453_v44 = vpop.f32.mrb[1].mxu1  ;;  %2471 = vmatmul.mubr.msk.f32.vlgmr.msra.gmra.mrb[2].mxu1 %vm51_vm1, %v643_v43 }
 0x1f7   :  { %2475 = vmatprep.mubr.msk.f32.mxu1 %vm2914_vm0, %v2915_v6  ;;  %2474 = vmatpush3.msk.msra.mxu1 %vm725_vm10, %v3230_v46 }
 0x1f8   :  { %2746 = vmatprep.subr.bf16.mxu1 %v2913_v3 }
 0x2c9   :  { %v716_v47 = vpop.f32.mrb[2].mxu1 }
 0x2ca   :  { %v720_v48 = vmul.f32 0.001953125, %v716_v47  ;;  %v2472_v49 = vpop.f32.mrb[3].mxu1 }
 0x2cc   :  { %2476 = vmatmul.mubr.msk.f32.vlgmr.msra.gmra.mrb[4].mxu1 %vm721_vm14, %v720_v48 }
 0x2cd   :  { %2488 = vmatprep.mubr.msk.f32.mxu1 %vm2914_vm0, %v2915_v6 }
 0x39f   :  { %v795_v51 = vpop.f32.mrb[4].mxu1 }
 0x3a0   :  { %v802_v52 = vrot.slane %v795_v51, %v3239_v50  ;;  %v2477_v53 = vpop.f32.mrb[5].mxu1 }
 0x3a2   :  { %v803_v54 = vsub.f32 %v3148_v1, %v802_v52  ;;  %v804_v55 = vsub.f32 %v3152_v5, %v802_v52  ;;  %v805_v56 = vsub.f32 %v3157_v15, %v802_v52  ;;  %v806_v57 = vsub.f32 %v3163_v22, %v802_v52 }
 0x3a3   :  { %v807_v58 = vsub.f32 %v3171_v29, %v802_v52 }
 0x3a4   :  { %v808_v59 = vmul.f32 %v803_v54, %v803_v54  ;;  %v809_v60 = vmul.f32 %v804_v55, %v804_v55  ;;  %v810_v61 = vmul.f32 %v805_v56, %v805_v56  ;;  %v811_v62 = vmul.f32 %v806_v57, %v806_v57 }
 0x3a5   :  { %v812_v2 = vmul.f32 %v807_v58, %v807_v58 }
 0x3a6   :  { %v2747_v63 = vpack.c.bf16 %v809_v60, %v808_v59  ;;  %v2750_v0 = vpack.c.bf16 %v811_v62, %v810_v61 }
 0x3a8   :  { %2748 = vmatpush3.bf16.msra.mxu1 %v2747_v63 }
 0x3a9   :  { %2749 = vmatprep.subr.bf16.mxu1 %v2913_v3 }
 0x3ac   :  { %2751 = vmatpush3.bf16.msra.mxu1 %v2750_v0  ;;  %v1155_v0 = vld [vmem:[%s3559_s4 + $0x10] sm:$0xff] }
 0x3ad   :  { %2486 = vmatprep.subr.mxu1 %v2915_v6 }
 0x3b0   :  { %2487 = vmatpush3.msk.msra.mxu1 %vm573_vm11, %v812_v2  ;;  %v1156_v2 = vld [vmem:[%s3559_s4 + $0x18] sm:$0xff] }
 0x3b1   :  { %2489 = vmatmul.mubr.msk.f32.vlgmr.msra.gmra.mrb[6].mxu1 %vm569_vm12, %v3175_v31  ;;  %2752 = vmatprep.subr.bf16.mxu1 %v2913_v3 }
 0x3b2   :  { %2754 = vmatpush3.bf16.msk.msra.mxu1 %vm3177_vm13, %v2916_v37  ;;  %2507 = vmatprep.mubr.msk.f32.mxu1 %vm2914_vm0, %v2915_v6 }
 0x3b3   :  { %2755 = vmatprep.subr.bf16.mxu1 %v2913_v3 }
 0x3b6   :  { %2757 = vmatpush3.bf16.msk.msra.mxu1 %vm3196_vm2, %v2916_v37 }
 0x3b7   :  { %2758 = vmatprep.subr.bf16.mxu1 %v2913_v3 }
 0x3ba   :  { %2760 = vmatpush3.bf16.msk.msra.mxu1 %vm3206_vm5, %v2916_v37 }
 0x3bb   :  { %2761 = vmatprep.subr.bf16.mxu1 %v2913_v3 }
 0x3be   :  { %2763 = vmatpush3.bf16.msk.msra.mxu1 %vm3216_vm8, %v2916_v37 }
 0x3bf   :  { %2510 = vmatprep.subr.mxu1 %v2915_v6 }
 0x484   :  { %v882_v4 = vpop.f32.mrb[6].mxu1 }
 0x485   :  { %v2490_v8 = vpop.f32.mrb[7].mxu1  ;;  %2508 = vmatmul.mubr.msk.f32.vlgmr.msra.gmra.mrb[8].mxu1 %vm51_vm1, %v882_v4 }
 0x486   :  { %2511 = vmatpush3.msk.msra.mxu1 %vm725_vm10, %v3230_v46  ;;  %2512 = vmatprep.mubr.msk.f32.mxu1 %vm2914_vm0, %v2915_v6  ;;  %v2780_v8 = vpack.c.bf16 %v1156_v2, %v1155_v0 }
 0x487   :  { %2515 = vmatprep.subr.mxu1 %v2915_v6 }
 0x558   :  { %v955_v10 = vpop.f32.mrb[8].mxu1 }
 0x559   :  { %v959_v11 = vmul.f32 0.001953125, %v955_v10  ;;  %v2509_v14 = vpop.f32.mrb[9].mxu1  ;;  %v1157_v10 = vld [vmem:[%s3559_s4 + $0x20] sm:$0xff] }
 0x55b   :  { %v961_v16 = vadd.f32 1e-05, %v959_v11  ;;  %v1158_v11 = vld [vmem:[%s3559_s4 + $0x28] sm:$0xff] }
 0x55d   :  { %2885 = vrsqrt.f32 %v961_v16  ;;  %v2783_v16 = vpack.c.bf16 %v1158_v11, %v1157_v10 }
 0x567   :  { %v2886_v18 = vpop.eup %2885 }
 0x568   :  { %v963_v19 = vmul.f32 %v2886_v18, %v960_v17  ;;  %v1159_v17 = vld [vmem:[%s3559_s4 + $0x30] sm:$0xff]  ;;  %v1160_v18 = vld [vmem:[%s3559_s4 + $0x38] sm:$0xff] }
 0x56a   :  { %2513 = vmatmul.mubr.msk.f32.vlgmr.msra.gmra.mrb[10].mxu1 %vm721_vm14, %v963_v19  ;;  %v965_v21 = vmul.f32 %v963_v19, %v720_v48 }
 0x56b   :  { %2516 = vmatpush3.msk.msra.mxu1 %vm725_vm10, %v3230_v46  ;;  %2517 = vmatprep.mubr.msk.f32.mxu1 %vm2914_vm0, %v2915_v6 }
 0x56c   :  { %v966_v23 = vsub.f32 %v964_v20, %v965_v21  ;;  %2800 = vmatprep.subr.bf16.mxu1 %v2913_v3  ;;  %v2786_v20 = vpack.c.bf16 %v1160_v18, %v1159_v17 }
 0x56e   :  { %2518 = vmatmul.mubr.msk.f32.vlgmr.msra.gmra.mrb[12].mxu1 %vm721_vm14, %v966_v23  ;;  %v1389_v23 = vld [vmem:[%s3559_s4 + $0x80] sm:$0xff] }
 0x56f   :  { %2623 = vmatprep.mubr.msk.f32.mxu1 %vm2914_vm0, %v2915_v6  ;;  %v2789_v26 = vpack.c.bf16 %v1390_v24, %v1389_v23 }
 0x63d   :  { %v1036_v43 = vpop.f32.mrb[10].mxu1 }
 0x63e   :  { %v1116_v44 = vrot.slane %v1036_v43, %v3239_v50  ;;  %v2514_v45 = vpop.f32.mrb[11].mxu1  ;;  %v1396_v43 = vld [vmem:[%s3559_s4 + $0xb8] sm:$0xff] }
 0x63f   :  { %v2798_v45 = vpack.c.bf16 %v1396_v43, %v1395_v40  ;;  %v2071_v43 = vrot.slane %v3020_v12, 6 }
 0x640   :  { %v1117_v47 = vmul.f32 %v1116_v44, %v3148_v1  ;;  %v1118_v48 = vmul.f32 %v1116_v44, %v3152_v5  ;;  %v1119_v49 = vmul.f32 %v1116_v44, %v3157_v15  ;;  %v1120_v51 = vmul.f32 %v1116_v44, %v3163_v22  ;;  %v1153_v22 = vld [vmem:[%s3559_s4] sm:$0xff] }
 0x641   :  { %v1121_v52 = vmul.f32 %v1116_v44, %v3171_v29  ;;  %v1109_v53 = vpop.f32.mrb[12].mxu1  ;;  %v1154_v29 = vld [vmem:[%s3559_s4 + $0x8] sm:$0xff] }
 0x642   :  { %v1125_v54 = vrot.slane %v1109_v53, %v3239_v50  ;;  %v2519_v55 = vpop.f32.mrb[13].mxu1  ;;  %v2777_v63 = vpack.c.bf16 %v1154_v29, %v1153_v22 }
 0x644   :  { %v1126_v56 = vadd.f32 %v1125_v54, %v1117_v47  ;;  %v1127_v57 = vadd.f32 %v1125_v54, %v1118_v48  ;;  %v1128_v58 = vadd.f32 %v1125_v54, %v1119_v49  ;;  %v1129_v59 = vadd.f32 %v1125_v54, %v1120_v51 }
 0x645   :  { %v1130_v60 = vadd.f32 %v1125_v54, %v1121_v52 }
 0x646   :  { %v1131_v1 = vmax.f32 %v1126_v56, 0.0  ;;  %v1132_v61 = vmax.f32 %v1127_v57, 0.0  ;;  %v1133_v5 = vmax.f32 %v1128_v58, 0.0  ;;  %v1134_v62 = vmax.f32 %v1129_v59, 0.0 }
 0x647   :  { %v1135_v15 = vmax.f32 %v1130_v60, 0.0 }
 0x648   :  { %1141 = vst.msk [vmem:[#allocation3 + $0x1] sm:$0xff] %vm51_vm1, %v1131_v1  ;;  %1142 = vst.msk [vmem:[#allocation3 + $0x9] sm:$0xff] %vm51_vm1, %v1132_v61 }
 0x649   :  { %1144 = vst.msk [vmem:[#allocation3 + $0x11] sm:$0xfc] %vm1143_vm15, %v1133_v5 }
 0x64a   :  { %1145 = vst.msk [vmem:[#allocation3 + $0x19] sm:$0xff] %vm51_vm1, %v1134_v62 }
 0x64b   :  { %1147 = vst.msk [vmem:[#allocation3 + $0x21] sm:$0x3] %vm1146_vm3, %v1135_v15 }
 0x64f   :  { %v1161_v4 = vld [vmem:[#allocation3 + $0x1] sm:$0xff]  ;;  %v1162_v14 = vld [vmem:[#allocation3 + $0x9] sm:$0xff] }
 0x650   :  { %2537 = vmatmul.mubr.msk.f32.vlgmr.msra.gmra.mrb[10].mxu0 %vm51_vm1, %v1161_v4  ;;  %v1163_v19 = vld [vmem:[#allocation3 + $0x11] sm:$0xff]  ;;  %v1148_v30 = vld [vmem:[#allocation3] sm:$0xff]  ;;  %v1149_v36 = vld [vmem:[#allocation3 + $0x8] sm:$0xff] }
 0x651   :  { %2778 = vmatpush3.bf16.msra.mxu0 %v2777_v63  ;;  %2539 = vmatprep.mubr.msk.f32.mxu0 %vm2914_vm0, %v2915_v6  ;;  %v1164_v21 = vld [vmem:[#allocation3 + $0x19] sm:$0xff]  ;;  %v1150_v44 = vld [vmem:[#allocation3 + $0x10] sm:$0xff]  ;;  %v1384_v49 = vld [vmem:[#allocation3 + $0x2] sm:$0xff] }
 0x652   :  { %2779 = vmatprep.subr.bf16.mxu0 %v2913_v3  ;;  %v1165_v25 = vld [vmem:[#allocation3 + $0x21] sm:$0x3]  ;;  %v1151_v47 = vld [vmem:[#allocation3 + $0x18] sm:$0xff]  ;;  %v1385_v51 = vld [vmem:[#allocation3 + $0xa] sm:$0xff] }
 0x653   :  { %v1152_v48 = vld [vmem:[#allocation3 + $0x20] sm:$0x3]  ;;  %v1386_v52 = vld [vmem:[#allocation3 + $0x12] sm:$0xff]  ;;  %v1388_v54 = vld [vmem:[#allocation3 + $0x22] sm:$0x3] }
 0x654   :  { %2540 = vmatmul.mubr.msk.f32.gmra.mrb[12].mxu0 %vm51_vm1, %v1162_v14  ;;  %v1387_v53 = vld [vmem:[#allocation3 + $0x1a] sm:$0xff] }
 0x655   :  { %2781 = vmatpush3.bf16.msra.mxu0 %v2780_v8  ;;  %2542 = vmatprep.mubr.msk.f32.mxu0 %vm2914_vm0, %v2915_v6 }
 0x656   :  { %2782 = vmatprep.subr.bf16.mxu0 %v2913_v3 }
 0x658   :  { %2543 = vmatmul.mubr.msk.f32.gmra.mrb[14].mxu0 %vm51_vm1, %v1163_v19 }
 0x659   :  { %2545 = vmatprep.mubr.msk.f32.mxu0 %vm2914_vm0, %v2915_v6  ;;  %2784 = vmatpush3.bf16.msra.mxu0 %v2783_v16 }
 0x65a   :  { %2785 = vmatprep.subr.bf16.mxu0 %v2913_v3 }
 0x65c   :  { %2546 = vmatmul.mubr.msk.f32.gmra.mrb[16].mxu0 %vm51_vm1, %v1164_v21 }
 0x65d   :  { %2548 = vmatprep.mubr.msk.f32.mxu0 %vm2914_vm0, %v2915_v6  ;;  %2787 = vmatpush3.bf16.msra.mxu0 %v2786_v20 }
 0x65e   :  { %2788 = vmatprep.subr.bf16.mxu0 %v2913_v3 }
 0x660   :  { %2549 = vmatmul.mubr.msk.f32.gmra.mrb[18].mxu0 %vm51_vm1, %v1165_v25 }
 0x661   :  { %2567 = vmatprep.mubr.msk.f32.mxu0 %vm2914_vm0, %v2915_v6 }
 0x664   :  { %2568 = vmatmul.mubr.msk.f32.vlgmr.msra.gmra.mrb[10].mxu0 %vm51_vm1, %v1148_v30 }
 0x665   :  { %2790 = vmatpush3.bf16.msra.mxu0 %v2789_v26  ;;  %2570 = vmatprep.mubr.msk.f32.mxu0 %vm2914_vm0, %v2915_v6 }
 0x666   :  { %2791 = vmatprep.subr.bf16.mxu0 %v2913_v3 }
 0x668   :  { %2571 = vmatmul.mubr.msk.f32.gmra.mrb[12].mxu0 %vm51_vm1, %v1149_v36 }
 0x669   :  { %2793 = vmatpush3.bf16.msra.mxu0 %v2792_v33  ;;  %2573 = vmatprep.mubr.msk.f32.mxu0 %vm2914_vm0, %v2915_v6  ;;  %v1892_v33 = vld [vmem:[%s3561_s6] sm:$0x1] }
 0x66a   :  { %2794 = vmatprep.subr.bf16.mxu0 %v2913_v3 }
 0x66c   :  { %2574 = vmatmul.mubr.msk.f32.gmra.mrb[14].mxu0 %vm51_vm1, %v1150_v44  ;;  %v2072_v44 = vrot.slane %v3027_v13, 6 }
 0x66d   :  { %2576 = vmatprep.mubr.msk.f32.mxu0 %vm2914_vm0, %v2915_v6  ;;  %2796 = vmatpush3.bf16.msra.mxu0 %v2795_v39 }
 0x66e   :  { %2797 = vmatprep.subr.bf16.mxu0 %v2913_v3 }
 0x670   :  { %2577 = vmatmul.mubr.msk.f32.gmra.mrb[16].mxu0 %vm51_vm1, %v1151_v47 }
 0x671   :  { %2579 = vmatprep.mubr.msk.f32.mxu0 %vm2914_vm0, %v2915_v6  ;;  %2799 = vmatpush3.bf16.msra.mxu0 %v2798_v45 }
 0x674   :  { %2580 = vmatmul.mubr.msk.f32.gmra.mrb[18].mxu0 %vm51_vm1, %v1152_v48 }
 0x675   :  { %2598 = vmatprep.mubr.msk.f32.mxu0 %vm2914_vm0, %v2915_v6 }
 0x678   :  { %2599 = vmatmul.mubr.msk.f32.vlgmr.msra.gmra.mrb[10].mxu0 %vm51_vm1, %v1384_v49 }
 0x679   :  { %2601 = vmatprep.mubr.msk.f32.mxu0 %vm2914_vm0, %v2915_v6 }
 0x67c   :  { %2602 = vmatmul.mubr.msk.f32.gmra.mrb[12].mxu0 %vm51_vm1, %v1385_v51 }
 0x67d   :  { %2604 = vmatprep.mubr.msk.f32.mxu0 %vm2914_vm0, %v2915_v6 }
 0x680   :  { %2605 = vmatmul.mubr.msk.f32.gmra.mrb[14].mxu0 %vm51_vm1, %v1386_v52 }
 0x681   :  { %2607 = vmatprep.mubr.msk.f32.mxu0 %vm2914_vm0, %v2915_v6 }
 0x684   :  { %2608 = vmatmul.mubr.msk.f32.gmra.mrb[16].mxu0 %vm51_vm1, %v1387_v53  ;;  %v2073_v53 = vsel %vm573_vm11, %v2071_v43, %v2072_v44 }
 0x685   :  { %2610 = vmatprep.mubr.msk.f32.mxu0 %vm2914_vm0, %v2915_v6 }
 0x688   :  { %2611 = vmatmul.mubr.msk.f32.gmra.mrb[18].mxu0 %vm51_vm1, %v1388_v54 }
 0x74b   :  { %v3430_v55 = vpop.f32.mrb[10].mxu0 }
 0x74c   :  { %v2600_v56 = vpop.f32.mrb[11].mxu0 }
 0x74f   :  { %v3432_v57 = vpop.f32.mrb[12].mxu0 }
 0x750   :  { %v2801_v58 = vpack.c.bf16 %v3432_v57, %v3430_v55  ;;  %v2603_v59 = vpop.f32.mrb[13].mxu0 }
 0x752   :  { %2802 = vmatpush3.bf16.msra.mxu1 %v2801_v58 }
 0x753   :  { %v3436_v60 = vpop.f32.mrb[14].mxu0  ;;  %2803 = vmatprep.subr.bf16.mxu1 %v2913_v3 }
 0x754   :  { %v2606_v1 = vpop.f32.mrb[15].mxu0 }
 0x757   :  { %v3439_v61 = vpop.f32.mrb[16].mxu0 }
 0x758   :  { %v2804_v5 = vpack.c.bf16 %v3439_v61, %v3436_v60  ;;  %v2609_v62 = vpop.f32.mrb[17].mxu0 }
 0x75a   :  { %2805 = vmatpush3.bf16.msra.mxu1 %v2804_v5 }
 0x75b   :  { %v3443_v15 = vpop.f32.mrb[18].mxu0  ;;  %2621 = vmatprep.subr.mxu1 %v2915_v6 }
 0x75c   :  { %v2612_v22 = vpop.f32.mrb[19].mxu0 }
 0x75e   :  { %2622 = vmatpush3.msk.msra.mxu1 %vm573_vm11, %v3443_v15 }
 0x75f   :  { %2624 = vmatmul.mubr.msk.f32.vlgmr.msra.gmra.mrb[14].mxu1 %vm569_vm12, %v3175_v31  ;;  %2806 = vmatprep.subr.bf16.mxu1 %v2913_v3 }
 0x760   :  { %2808 = vmatpush3.bf16.msk.msra.mxu1 %vm3177_vm13, %v2916_v37  ;;  %2642 = vmatprep.mubr.msk.f32.mxu1 %vm2914_vm0, %v2915_v6 }
 0x761   :  { %2809 = vmatprep.subr.bf16.mxu1 %v2913_v3 }
 0x764   :  { %2811 = vmatpush3.bf16.msk.msra.mxu1 %vm3196_vm2, %v2916_v37 }
 0x765   :  { %2812 = vmatprep.subr.bf16.mxu1 %v2913_v3 }
 0x768   :  { %2814 = vmatpush3.bf16.msk.msra.mxu1 %vm3206_vm5, %v2916_v37 }
 0x769   :  { %2815 = vmatprep.subr.bf16.mxu1 %v2913_v3 }
 0x76c   :  { %2817 = vmatpush3.bf16.msk.msra.mxu1 %vm3216_vm8, %v2916_v37 }
 0x76d   :  { %2645 = vmatprep.subr.mxu1 %v2915_v6 }
 0x832   :  { %v1576_v29 = vpop.f32.mrb[14].mxu1 }
 0x833   :  { %v2625_v63 = vpop.f32.mrb[15].mxu1  ;;  %2643 = vmatmul.mubr.msk.f32.vlgmr.msra.gmra.mrb[16].mxu1 %vm51_vm1, %v1576_v29 }
 0x834   :  { %2646 = vmatpush3.msk.msra.mxu1 %vm725_vm10, %v3230_v46  ;;  %2647 = vmatprep.mubr.msk.f32.mxu1 %vm2914_vm0, %v2915_v6 }
 0x835   :  { %2818 = vmatprep.subr.bf16.mxu1 %v2913_v3 }
 0x906   :  { %v1649_v0 = vpop.f32.mrb[16].mxu1 }
 0x907   :  { %v1653_v2 = vmul.f32 0.001953125, %v1649_v0  ;;  %v2644_v4 = vpop.f32.mrb[17].mxu1 }
 0x909   :  { %2648 = vmatmul.mubr.msk.f32.vlgmr.msra.gmra.mrb[18].mxu1 %vm721_vm14, %v1653_v2 }
 0x90a   :  { %2660 = vmatprep.mubr.msk.f32.mxu1 %vm2914_vm0, %v2915_v6 }
 0x9dc   :  { %v1723_v8 = vpop.f32.mrb[18].mxu1 }
 0x9dd   :  { %v1730_v10 = vrot.slane %v1723_v8, %v3239_v50  ;;  %v2649_v11 = vpop.f32.mrb[19].mxu1 }
 0x9df   :  { %v1731_v14 = vsub.f32 %v3430_v55, %v1730_v10  ;;  %v1732_v16 = vsub.f32 %v3432_v57, %v1730_v10  ;;  %v1733_v17 = vsub.f32 %v3436_v60, %v1730_v10  ;;  %v1734_v18 = vsub.f32 %v3439_v61, %v1730_v10 }
 0x9e0   :  { %v1735_v19 = vsub.f32 %v3443_v15, %v1730_v10 }
 0x9e1   :  { %v1736_v20 = vmul.f32 %v1731_v14, %v1731_v14  ;;  %v1737_v21 = vmul.f32 %v1732_v16, %v1732_v16  ;;  %v1738_v23 = vmul.f32 %v1733_v17, %v1733_v17  ;;  %v1739_v24 = vmul.f32 %v1734_v18, %v1734_v18 }
 0x9e2   :  { %v1740_v27 = vmul.f32 %v1735_v19, %v1735_v19 }
 0x9e3   :  { %v2819_v25 = vpack.c.bf16 %v1737_v21, %v1736_v20  ;;  %v2822_v26 = vpack.c.bf16 %v1739_v24, %v1738_v23 }
 0x9e5   :  { %2820 = vmatpush3.bf16.msra.mxu1 %v2819_v25 }
 0x9e6   :  { %2821 = vmatprep.subr.bf16.mxu1 %v2913_v3 }
 0x9e9   :  { %2823 = vmatpush3.bf16.msra.mxu1 %v2822_v26 }
 0x9ea   :  { %2658 = vmatprep.subr.mxu1 %v2915_v6 }
 0x9ed   :  { %2659 = vmatpush3.msk.msra.mxu1 %vm573_vm11, %v1740_v27 }
 0x9ee   :  { %2661 = vmatmul.mubr.msk.f32.vlgmr.msra.gmra.mrb[20].mxu1 %vm569_vm12, %v3175_v31  ;;  %2824 = vmatprep.subr.bf16.mxu1 %v2913_v3 }
 0x9ef   :  { %2826 = vmatpush3.bf16.msk.msra.mxu1 %vm3177_vm13, %v2916_v37  ;;  %2679 = vmatprep.mubr.msk.f32.mxu1 %vm2914_vm0, %v2915_v6 }
 0x9f0   :  { %2827 = vmatprep.subr.bf16.mxu1 %v2913_v3 }
 0x9f3   :  { %2829 = vmatpush3.bf16.msk.msra.mxu1 %vm3196_vm2, %v2916_v37 }
 0x9f4   :  { %2830 = vmatprep.subr.bf16.mxu1 %v2913_v3 }
 0x9f7   :  { %2832 = vmatpush3.bf16.msk.msra.mxu1 %vm3206_vm5, %v2916_v37 }
 0x9f8   :  { %2833 = vmatprep.subr.bf16.mxu1 %v2913_v3 }
 0x9fb   :  { %2835 = vmatpush3.bf16.msk.msra.mxu1 %vm3216_vm8, %v2916_v37  ;;  %v1888_v37 = vld [vmem:[%s3560_s5] sm:$0x1]  ;;  %s2917_s5 = smov [#allocation4]  }
 0x9fc   :  { %2682 = vmatprep.subr.mxu1 %v2915_v6  ;;  %s2091_s6 = sshll.u32 %s2917_s5, 4  ;;  %s2092_s6 = int_to_ptr.vmem [resolvable:$true] %s2091_s6 }
 0x9fd   :  { %s2889_s9 = scalar_lea.vmem %s2092_s6, 512  ;;  %p2894_p1 = scmp.lt.s32.totalorder %s2092_s6, %s2092_s6 }
 0x9fe   :  { %p2890_p0 = scmp.ne.s32.totalorder %s2092_s6, %s2889_s9  ;;  %p2895_p2 = scmp.lt.s32.totalorder %s2889_s9, %s2889_s9 }
 0xa00   :  { %p2896_p3 = por %p2895_p2, %p2894_p1 }
 0xa02   :  { %p2897_p4 = pnand %p2896_p3, %p2890_p0 }
 0xac1   :  { %v1810_v31 = vpop.f32.mrb[20].mxu1 }
 0xac2   :  { %v2662_v32 = vpop.f32.mrb[21].mxu1  ;;  %2680 = vmatmul.mubr.msk.f32.vlgmr.msra.gmra.mrb[22].mxu1 %vm51_vm1, %v1810_v31 }
 0xac3   :  { %2683 = vmatpush3.msk.msra.mxu1 %vm725_vm10, %v3230_v46  ;;  %2684 = vmatprep.mubr.msk.f32.mxu1 %vm2914_vm0, %v2915_v6 }
 0xac4   :  { %2687 = vmatprep.subr.mxu1 %v2915_v6 }
 0xb95   :  { %v1883_v38 = vpop.f32.mrb[22].mxu1 }
 0xb96   :  { %v1887_v3 = vmul.f32 0.001953125, %v1883_v38  ;;  %v2681_v41 = vpop.f32.mrb[23].mxu1 }
 0xb98   :  { %v1889_v28 = vadd.f32 1e-05, %v1887_v3 }
 0xb9a   :  { %2887 = vrsqrt.f32 %v1889_v28 }
 0xba4   :  { %v2888_v42 = vpop.eup %2887 }
 0xba5   :  { %v1891_v30 = vmul.f32 %v2888_v42, %v1888_v37 }
 0xba7   :  { %2685 = vmatmul.mubr.msk.f32.vlgmr.msra.gmra.mrb[24].mxu1 %vm721_vm14, %v1891_v30  ;;  %v1893_v34 = vmul.f32 %v1891_v30, %v1653_v2 }
 0xba8   :  { %2688 = vmatpush3.msk.msra.mxu1 %vm725_vm10, %v3230_v46  ;;  %2689 = vmatprep.mubr.msk.f32.mxu1 %vm2914_vm0, %v2915_v6 }
 0xba9   :  { %v1894_v35 = vsub.f32 %v1892_v33, %v1893_v34 }
 0xbab   :  { %2690 = vmatmul.mubr.msk.f32.vlgmr.msra.gmra.mrb[26].mxu1 %vm721_vm14, %v1894_v35 }
 0xc7a   :  { %v1964_v36 = vpop.f32.mrb[24].mxu1 }
 0xc7b   :  { %v2044_v39 = vrot.slane %v1964_v36, %v3239_v50  ;;  %v2686_v40 = vpop.f32.mrb[25].mxu1 }
 0xc7d   :  { %v2045_v45 = vmul.f32 %v2044_v39, %v3430_v55  ;;  %v2046_v47 = vmul.f32 %v2044_v39, %v3432_v57  ;;  %v2047_v46 = vmul.f32 %v2044_v39, %v3436_v60  ;;  %v2048_v48 = vmul.f32 %v2044_v39, %v3439_v61 }
 0xc7e   :  { %v2049_v6 = vmul.f32 %v2044_v39, %v3443_v15  ;;  %v2037_v49 = vpop.f32.mrb[26].mxu1 }
 0xc7f   :  { %v2053_v51 = vrot.slane %v2037_v49, %v3239_v50  ;;  %v2691_v52 = vpop.f32.mrb[27].mxu1 }
 0xc81   :  { %v2054_v54 = vadd.f32 %v2053_v51, %v2045_v45  ;;  %v2055_v12 = vadd.f32 %v2053_v51, %v2046_v47  ;;  %v2056_v56 = vadd.f32 %v2053_v51, %v2047_v46  ;;  %v2057_v13 = vadd.f32 %v2053_v51, %v2048_v48 }
 0xc82   :  { %v2058_v58 = vadd.f32 %v2053_v51, %v2049_v6 }
 0xc83   :  { %v2061_v55 = vadd.f32 %v2054_v54, %v2982_v7  ;;  %v2062_v57 = vadd.f32 %v2055_v12, %v3006_v9  ;;  %v2077_v59 = vadd.f32 %v2071_v43, %v2056_v56  ;;  %v2078_v60 = vadd.f32 %v2073_v53, %v2057_v13 }
 0xc84   :  { %v2079_v1 = vadd.f32 %v2072_v44, %v2058_v58 }
 0xc85   :  { %v2063_v61 = vmax.f32 %v2061_v55, 0.0  ;;  %v2064_v5 = vmax.f32 %v2062_v57, 0.0  ;;  %v2080_v50 = vmax.f32 %v2077_v59, 0.0  ;;  %v2081_v62 = vmax.f32 %v2078_v60, 0.0 }
 0xc86   :  { %v2082_v15 = vmax.f32 %v2079_v1, 0.0 }
 0xc87   :  { %2065 = vst.msk [vmem:[#allocation4] sm:$0xff] %vm51_vm1, %v2063_v61  ;;  %2066 = vst.msk [vmem:[#allocation4 + $0x8] sm:$0xff] %vm51_vm1, %v2064_v5 }
 0xc88   :  { %2083 = vst.msk [vmem:[#allocation4 + $0xe] sm:$0xfc] %vm1143_vm15, %v2080_v50 }
 0xc89   :  { %2084 = vst.msk [vmem:[#allocation4 + $0x16] sm:$0xff] %vm51_vm1, %v2081_v62 }
 0xc8a   :  { %2085 = vst.msk [vmem:[#allocation4 + $0x1e] sm:$0x3] %vm1146_vm3, %v2082_v15 }
 0xc8b   :  { %2900 = shalt.err (!%p2897_p4)
}
 0xc8c   :  { %s2901_s2 = scalar_lea.hbm %s3562_s7, 512 }
 0xc8d   :  { %p2902_p5 = scmp.ne.s32.totalorder %s3562_s7, %s2901_s2  ;;  %p2905_p6 = scmp.lt.u32.totalorder %s2901_s2, %s3562_s7 }
 0xc8f   :  { %p2907_p7 = pnand %p2905_p6, %p2902_p5 }
 0xc91   :  { %2910 = shalt.err (!%p2907_p7)
}
 0xc92   :  { %s2918_s15 = smov 128   ;;  %s2919_s16 = smov 8  }
 0xc93   :  { %2097 = dma.vmem_to_hbm [thread:$0]  %s2092_s6, 512, %s3562_s7, [#allocation5], %s2918_s15, %s2918_s15, %s2919_s16  }
 0xc94   :  { %2911 = dma.done.wait [#allocation5], 512  }
 0xc95   :  { %2912 = vsyncadd [#allocation5], 4294966784 }
 0xc96   :  { %2101 = vsyncpa [#allocation5], 1 }

</bundles_post_ra>
